<compile_context>
chip_gen: v6e
topology: v6e:2x2x1
jax: 0.10.0
libtpu: 0.0.40
codegen_flags: <defaults>
</compile_context>

<pallas_src>
import jax
import jax.numpy as jnp
from jax import lax
from jax.experimental import pallas as pl
from jax.experimental.pallas import tpu as pltpu


def _lstm_attn_kernel(x_ref,                                    # (S*B, Dpad)  rows r = t*B + b
                      wih1_ref, whh1_ref, b1_ref,               # (Dpad,4H), (H,4H), (1,4H)
                      wih2_ref, whh2_ref, b2_ref,               # (H,4H),   (H,4H), (1,4H)
                      wa_ref, ba_ref, va_ref,                   # (H,H), (1,H), (1,H)
                      pseg_ref, psegt_ref,                      # (S*B,B), (B,S*B) one-hot segment mats
                      wf1_ref, bf1_ref, wf2_ref, bf2_ref,       # (H,64), (1,64), (64,O), (1,O)
                      out_ref, attn_ref,                        # (B,O), (S*B,1)
                      gx_ref, seq_ref):                         # scratch (S*B,4H), (S*B,H)
    SB = gx_ref.shape[0]
    H = whh1_ref.shape[0]
    B = out_ref.shape[0]
    S = SB // B

    # ---- hoisted layer-1 input projection: ONE (S*B,Dpad)@(Dpad,4H) matmul ----
    gx_ref[...] = (jnp.dot(x_ref[...], wih1_ref[...],
                           preferred_element_type=jnp.float32) + b1_ref[...])

    # Load weights once; loop-invariant values stay in registers/VMEM reads.
    whh1 = whh1_ref[...]
    wih2 = wih2_ref[...]
    whh2 = whh2_ref[...]
    b2 = b2_ref[...]

    def act(gates, c_prev):
        # full-width nonlinearities (2 EUP vreg ops), then 32-lane gate extraction
        sig = jax.nn.sigmoid(gates)
        th = jnp.tanh(gates)
        i = sig[:, 0:H]
        f = sig[:, H:2 * H]
        g = th[:, 2 * H:3 * H]
        o = sig[:, 3 * H:4 * H]
        c_new = f * c_prev + i * g
        h_new = o * jnp.tanh(c_new)
        return h_new, c_new

    def step(t, carry):
        h1, c1, h2, c2 = carry
        r = t * B
        # depends only on previous-step state -> overlaps layer-1's matmul chain
        g2_rec = jnp.dot(h2, whh2, preferred_element_type=jnp.float32)
        g1 = gx_ref[pl.ds(r, B), :] + jnp.dot(h1, whh1,
                                              preferred_element_type=jnp.float32)
        h1n, c1n = act(g1, c1)
        # TODO(synk): LSTM inter-layer dropout omitted (inference/eval semantics).
        g2 = g2_rec + jnp.dot(h1n, wih2, preferred_element_type=jnp.float32) + b2
        h2n, c2n = act(g2, c2)
        seq_ref[pl.ds(r, B), :] = h2n                            # lstm_out rows for step t
        return (h1n, c1n, h2n, c2n)

    z = jnp.zeros((B, H), jnp.float32)
    lax.fori_loop(0, S, step, (z, z, z, z), unroll=True)

    # ---- attention, hoisted out of the recurrence (one matmul over all steps) ----
    hs = seq_ref[...]                                            # (S*B, H)
    u = jnp.tanh(jnp.dot(hs, wa_ref[...],
                         preferred_element_type=jnp.float32) + ba_ref[...])
    sc = jnp.sum(u * va_ref[...], axis=-1, keepdims=True)        # (S*B, 1)

    # softmax over time within each batch segment (rows r with r % B == b);
    # subtracting the global max is mathematically identical and numerically safe.
    m = jnp.max(sc, keepdims=True)                               # (1, 1)
    e = jnp.exp(sc - m)                                          # (S*B, 1)
    pseg = pseg_ref[...]                                         # (S*B, B)
    denom_b = jnp.sum(e * pseg, axis=0, keepdims=True)           # (1, B) per-batch sums
    denom = jnp.sum(pseg * denom_b, axis=1, keepdims=True)       # (S*B, 1) per-row denom
    w = e / denom                                                # (S*B, 1) attention weights
    attn_ref[...] = w

    # context[b] = sum_t w[t,b] * lstm_out[t,b]   (one (B,S*B)@(S*B,H) matmul)
    context = jnp.dot(psegt_ref[...], w * hs,
                      preferred_element_type=jnp.float32)        # (B, H)

    hid = jnp.maximum(
        jnp.dot(context, wf1_ref[...], preferred_element_type=jnp.float32)
        + bf1_ref[...], 0.0)
    # TODO(synk): fc-head dropout omitted (inference/eval semantics).
    out_ref[...] = (jnp.dot(hid, wf2_ref[...],
                            preferred_element_type=jnp.float32) + bf2_ref[...])


def init_params(key, input_dim=1, output_dim=1, hidden_size=32):
    """Deterministic synthetic parameters matching the PyTorch module shapes."""
    H = hidden_size
    ks = jax.random.split(key, 16)

    def u(k, shape, bound):
        return jax.random.uniform(k, shape, jnp.float32, -bound, bound)

    kh = 1.0 / float(H) ** 0.5
    k64 = 1.0 / float(64) ** 0.5
    return dict(
        # nn.LSTM layer 0
        w_ih1=u(ks[0], (4 * H, input_dim), kh),
        w_hh1=u(ks[1], (4 * H, H), kh),
        b_ih1=u(ks[2], (4 * H,), kh),
        b_hh1=u(ks[3], (4 * H,), kh),
        # nn.LSTM layer 1
        w_ih2=u(ks[4], (4 * H, H), kh),
        w_hh2=u(ks[5], (4 * H, H), kh),
        b_ih2=u(ks[6], (4 * H,), kh),
        b_hh2=u(ks[7], (4 * H,), kh),
        # attention_linear (H -> H) and attention_vector (H -> 1, no bias)
        w_att=u(ks[8], (H, H), kh),
        b_att=u(ks[9], (H,), kh),
        v_att=u(ks[10], (1, H), kh),
        # fc: Linear(H, 64) -> ReLU -> Dropout -> Linear(64, output_dim)
        w_fc1=u(ks[11], (64, H), kh),
        b_fc1=u(ks[12], (64,), kh),
        w_fc2=u(ks[13], (output_dim, 64), k64),
        b_fc2=u(ks[14], (output_dim,), k64),
    )


@jax.jit
def forward(x, params):
    """Pallas forward pass; mirrors EnhancedAutoRegressiveLSTM.forward (eval mode)."""
    x = x.astype(jnp.float32)
    if x.ndim == 2:
        x = x[..., None]
    elif x.ndim != 3:
        raise ValueError(f"LSTM: Expected input to be 2D or 3D, got {x.ndim}D")

    B, S, D = x.shape
    H = params["w_hh1"].shape[1]
    out_dim = params["w_fc2"].shape[0]

    # time-major, flattened to rows r = t*B + b; pad the feature dim to a lane
    # multiple (padded weight rows are zero, so results are identical).
    D_pad = max(128, -(-D // 128) * 128)
    xt = jnp.transpose(x, (1, 0, 2)).reshape(S * B, D)
    xt = jnp.pad(xt, ((0, 0), (0, D_pad - D)))
    w_ih1_t = jnp.pad(params["w_ih1"].T, ((0, D_pad - D), (0, 0)))   # (D_pad, 4H)

    # one-hot segment matrices mapping flattened rows (r = t*B + b) <-> batch b
    rows_mod = jnp.arange(S * B, dtype=jnp.int32) % B
    pseg = (rows_mod[:, None] == jnp.arange(B, dtype=jnp.int32)[None, :]
            ).astype(jnp.float32)                                    # (S*B, B)
    psegt = pseg.T                                                   # (B, S*B)

    args = (
        xt,
        w_ih1_t, params["w_hh1"].T, (params["b_ih1"] + params["b_hh1"])[None, :],
        params["w_ih2"].T, params["w_hh2"].T,
        (params["b_ih2"] + params["b_hh2"])[None, :],
        params["w_att"].T, params["b_att"][None, :], params["v_att"],
        pseg, psegt,
        params["w_fc1"].T, params["b_fc1"][None, :],
        params["w_fc2"].T, params["b_fc2"][None, :],
    )

    vmem = pl.BlockSpec(memory_space=pltpu.MemorySpace.VMEM)
    out, attn_flat = pl.pallas_call(
        _lstm_attn_kernel,
        out_shape=(jax.ShapeDtypeStruct((B, out_dim), jnp.float32),
                   jax.ShapeDtypeStruct((S * B, 1), jnp.float32)),
        in_specs=[vmem] * len(args),
        out_specs=(vmem, vmem),
        scratch_shapes=[
            pltpu.VMEM((S * B, 4 * H), jnp.float32),   # hoisted layer-1 input gates
            pltpu.VMEM((S * B, H), jnp.float32),       # layer-2 hidden states (lstm_out)
        ],
    )(*args)

    attn = jnp.transpose(attn_flat.reshape(S, B, 1), (1, 0, 2))      # (B, S, 1)
    return out, attn


def reference_forward(x, params):
    """Pure-JAX reference mirroring the PyTorch module (eval mode)."""
    x = x.astype(jnp.float32)
    if x.ndim == 2:
        x = x[..., None]
    B, S, _ = x.shape
    H = params["w_hh1"].shape[1]

    def cell(x_t, h, c, w_ih, w_hh, b_ih, b_hh):
        gates = x_t @ w_ih.T + h @ w_hh.T + b_ih + b_hh
        i, f, g, o = jnp.split(gates, 4, axis=-1)
        i, f, o = jax.nn.sigmoid(i), jax.nn.sigmoid(f), jax.nn.sigmoid(o)
        g = jnp.tanh(g)
        c = f * c + i * g
        h = o * jnp.tanh(c)
        return h, c

    h1 = c1 = h2 = c2 = jnp.zeros((B, H), jnp.float32)
    outs = []
    for t in range(S):
        h1, c1 = cell(x[:, t, :], h1, c1, params["w_ih1"], params["w_hh1"],
                      params["b_ih1"], params["b_hh1"])
        h2, c2 = cell(h1, h2, c2, params["w_ih2"], params["w_hh2"],
                      params["b_ih2"], params["b_hh2"])
        outs.append(h2)
    lstm_out = jnp.stack(outs, axis=1)                           # (B, S, H)
    u = jnp.tanh(lstm_out @ params["w_att"].T + params["b_att"])
    scores = u @ params["v_att"].T                               # (B, S, 1)
    w = jax.nn.softmax(scores, axis=1)
    context = jnp.sum(w * lstm_out, axis=1)
    hid = jnp.maximum(context @ params["w_fc1"].T + params["b_fc1"], 0.0)
    out = hid @ params["w_fc2"].T + params["b_fc2"]
    return out, w


if __name__ == "__main__":
    B, S, H = 2, 8, 32
    key = jax.random.PRNGKey(0)
    pkey, xkey = jax.random.split(key)
    params = init_params(pkey, input_dim=1, output_dim=1, hidden_size=H)
    # 2-D input (batch, seq) exercises the unsqueeze(-1) path of the module.
    x = jax.random.normal(xkey, (B, S), jnp.float32)

    out, attn = forward(x, params)
    jax.block_until_ready((out, attn))

    ref_out, ref_attn = reference_forward(x, params)
    assert out.shape == (B, 1) and attn.shape == (B, S, 1)
    assert jnp.allclose(out, ref_out, atol=2e-3, rtol=2e-3)
    assert jnp.allclose(attn, ref_attn, atol=2e-3, rtol=2e-3)
    print("KERNEL_OK")
</pallas_src>

<mosaic_0001>
module attributes {stable_mosaic.version = 11 : i64} {
  func.func @_lstm_attn_kernel(%arg0: memref<16x128xf32, #tpu.memory_space<vmem>>, %arg1: memref<128x128xf32, #tpu.memory_space<vmem>>, %arg2: memref<32x128xf32, #tpu.memory_space<vmem>>, %arg3: memref<1x128xf32, #tpu.memory_space<vmem>>, %arg4: memref<32x128xf32, #tpu.memory_space<vmem>>, %arg5: memref<32x128xf32, #tpu.memory_space<vmem>>, %arg6: memref<1x128xf32, #tpu.memory_space<vmem>>, %arg7: memref<32x32xf32, #tpu.memory_space<vmem>>, %arg8: memref<1x32xf32, #tpu.memory_space<vmem>>, %arg9: memref<1x32xf32, #tpu.memory_space<vmem>>, %arg10: memref<16x2xf32, #tpu.memory_space<vmem>>, %arg11: memref<2x16xf32, #tpu.memory_space<vmem>>, %arg12: memref<32x64xf32, #tpu.memory_space<vmem>>, %arg13: memref<1x64xf32, #tpu.memory_space<vmem>>, %arg14: memref<64x1xf32, #tpu.memory_space<vmem>>, %arg15: memref<1x1xf32, #tpu.memory_space<vmem>>, %arg16: memref<2x1xf32, #tpu.memory_space<vmem>>, %arg17: memref<16x1xf32, #tpu.memory_space<vmem>>, %arg18: memref<16x128xf32, #tpu.memory_space<vmem>>, %arg19: memref<16x32xf32, #tpu.memory_space<vmem>>) attributes {dimension_semantics = [], scalar_prefetch = 0 : i64, scratch_operands = 2 : i64, tpu.core_type = #tpu.core_type<tc>} {
    %c0 = arith.constant 0 : index
    %c0_0 = arith.constant 0 : index
    %0 = vector.load %arg0[%c0, %c0_0] : memref<16x128xf32, #tpu.memory_space<vmem>>, vector<16x128xf32>
    %c0_1 = arith.constant 0 : index
    %c0_2 = arith.constant 0 : index
    %1 = vector.load %arg1[%c0_1, %c0_2] : memref<128x128xf32, #tpu.memory_space<vmem>>, vector<128x128xf32>
    %cst = arith.constant dense<0.000000e+00> : vector<16x128xf32>
    %2 = tpu.matmul %0, %1, %cst {dimension_numbers = #tpu.dot_dimension_numbers<[1], [0], [0], [1], [0, 0, 1, 1], [], []>} : vector<16x128xf32>, vector<128x128xf32>, vector<16x128xf32> -> vector<16x128xf32>
    %c0_3 = arith.constant 0 : index
    %c0_4 = arith.constant 0 : index
    %3 = vector.load %arg3[%c0_3, %c0_4] : memref<1x128xf32, #tpu.memory_space<vmem>>, vector<1x128xf32>
    %4 = vector.broadcast %3 : vector<1x128xf32> to vector<16x128xf32>
    %5 = arith.addf %2, %4 : vector<16x128xf32>
    %c0_5 = arith.constant 0 : index
    %c0_6 = arith.constant 0 : index
    %6 = vector.load %arg18[%c0_5, %c0_6] : memref<16x128xf32, #tpu.memory_space<vmem>>, vector<16x128xf32>
    tpu.vector_store %arg18[%c0_5, %c0_6], %5 {strides = array<i32>} : memref<16x128xf32, #tpu.memory_space<vmem>>, vector<16x128xf32>,
    %c0_7 = arith.constant 0 : index
    %c0_8 = arith.constant 0 : index
    %7 = vector.load %arg2[%c0_7, %c0_8] : memref<32x128xf32, #tpu.memory_space<vmem>>, vector<32x128xf32>
    %c0_9 = arith.constant 0 : index
    %c0_10 = arith.constant 0 : index
    %8 = vector.load %arg4[%c0_9, %c0_10] : memref<32x128xf32, #tpu.memory_space<vmem>>, vector<32x128xf32>
    %c0_11 = arith.constant 0 : index
    %c0_12 = arith.constant 0 : index
    %9 = vector.load %arg5[%c0_11, %c0_12] : memref<32x128xf32, #tpu.memory_space<vmem>>, vector<32x128xf32>
    %c0_13 = arith.constant 0 : index
    %c0_14 = arith.constant 0 : index
    %10 = vector.load %arg6[%c0_13, %c0_14] : memref<1x128xf32, #tpu.memory_space<vmem>>, vector<1x128xf32>
    %cst_15 = arith.constant 0.000000e+00 : f32
    %11 = vector.broadcast %cst_15 : f32 to vector<2x32xf32>
    %c0_i32 = arith.constant 0 : i32
    %c2_i32 = arith.constant 2 : i32
    %12 = arith.muli %c0_i32, %c2_i32 : i32
    %cst_16 = arith.constant dense<0.000000e+00> : vector<2x128xf32>
    %13 = tpu.matmul %11, %9, %cst_16 {dimension_numbers = #tpu.dot_dimension_numbers<[1], [0], [0], [1], [0, 0, 1, 1], [], []>} : vector<2x32xf32>, vector<32x128xf32>, vector<2x128xf32> -> vector<2x128xf32>
    %14 = arith.index_cast %12 : i32 to index
    %c0_17 = arith.constant 0 : index
    %15 = vector.load %arg18[%14, %c0_17] : memref<16x128xf32, #tpu.memory_space<vmem>>, vector<2x128xf32>
    %cst_18 = arith.constant dense<0.000000e+00> : vector<2x128xf32>
    %16 = tpu.matmul %11, %7, %cst_18 {dimension_numbers = #tpu.dot_dimension_numbers<[1], [0], [0], [1], [0, 0, 1, 1], [], []>} : vector<2x32xf32>, vector<32x128xf32>, vector<2x128xf32> -> vector<2x128xf32>
    %17 = arith.addf %15, %16 : vector<2x128xf32>
    %18 = arith.negf %17 : vector<2x128xf32>
    %19 = math.exp %18 : vector<2x128xf32>
    %cst_19 = arith.constant 1.000000e+00 : f32
    %20 = vector.broadcast %cst_19 : f32 to vector<2x128xf32>
    %21 = arith.addf %20, %19 : vector<2x128xf32>
    %22 = arith.divf %20, %21 : vector<2x128xf32>
    %23 = math.tanh %17 : vector<2x128xf32>
    %24 = vector.extract_strided_slice %22 {offsets = [0, 0], sizes = [2, 32], strides = [1, 1]} : vector<2x128xf32> to vector<2x32xf32>
    %25 = vector.extract_strided_slice %22 {offsets = [0, 32], sizes = [2, 32], strides = [1, 1]} : vector<2x128xf32> to vector<2x32xf32>
    %26 = vector.extract_strided_slice %23 {offsets = [0, 64], sizes = [2, 32], strides = [1, 1]} : vector<2x128xf32> to vector<2x32xf32>
    %27 = vector.extract_strided_slice %22 {offsets = [0, 96], sizes = [2, 32], strides = [1, 1]} : vector<2x128xf32> to vector<2x32xf32>
    %28 = arith.mulf %25, %11 : vector<2x32xf32>
    %29 = arith.mulf %24, %26 : vector<2x32xf32>
    %30 = arith.addf %28, %29 : vector<2x32xf32>
    %31 = math.tanh %30 : vector<2x32xf32>
    %32 = arith.mulf %27, %31 : vector<2x32xf32>
    %cst_20 = arith.constant dense<0.000000e+00> : vector<2x128xf32>
    %33 = tpu.matmul %32, %8, %cst_20 {dimension_numbers = #tpu.dot_dimension_numbers<[1], [0], [0], [1], [0, 0, 1, 1], [], []>} : vector<2x32xf32>, vector<32x128xf32>, vector<2x128xf32> -> vector<2x128xf32>
    %34 = arith.addf %13, %33 : vector<2x128xf32>
    %35 = vector.broadcast %10 : vector<1x128xf32> to vector<2x128xf32>
    %36 = arith.addf %34, %35 : vector<2x128xf32>
    %37 = arith.negf %36 : vector<2x128xf32>
    %38 = math.exp %37 : vector<2x128xf32>
    %cst_21 = arith.constant 1.000000e+00 : f32
    %39 = vector.broadcast %cst_21 : f32 to vector<2x128xf32>
    %40 = arith.addf %39, %38 : vector<2x128xf32>
    %41 = arith.divf %39, %40 : vector<2x128xf32>
    %42 = math.tanh %36 : vector<2x128xf32>
    %43 = vector.extract_strided_slice %41 {offsets = [0, 0], sizes = [2, 32], strides = [1, 1]} : vector<2x128xf32> to vector<2x32xf32>
    %44 = vector.extract_strided_slice %41 {offsets = [0, 32], sizes = [2, 32], strides = [1, 1]} : vector<2x128xf32> to vector<2x32xf32>
    %45 = vector.extract_strided_slice %42 {offsets = [0, 64], sizes = [2, 32], strides = [1, 1]} : vector<2x128xf32> to vector<2x32xf32>
    %46 = vector.extract_strided_slice %41 {offsets = [0, 96], sizes = [2, 32], strides = [1, 1]} : vector<2x128xf32> to vector<2x32xf32>
    %47 = arith.mulf %44, %11 : vector<2x32xf32>
    %48 = arith.mulf %43, %45 : vector<2x32xf32>
    %49 = arith.addf %47, %48 : vector<2x32xf32>
    %50 = math.tanh %49 : vector<2x32xf32>
    %51 = arith.mulf %46, %50 : vector<2x32xf32>
    %52 = arith.index_cast %12 : i32 to index
    %c0_22 = arith.constant 0 : index
    %53 = vector.load %arg19[%52, %c0_22] : memref<16x32xf32, #tpu.memory_space<vmem>>, vector<2x32xf32>
    tpu.vector_store %arg19[%52, %c0_22], %51 {strides = array<i32>} : memref<16x32xf32, #tpu.memory_space<vmem>>, vector<2x32xf32>,
    %c1_i32 = arith.constant 1 : i32
    %c2_i32_23 = arith.constant 2 : i32
    %54 = arith.muli %c1_i32, %c2_i32_23 : i32
    %cst_24 = arith.constant dense<0.000000e+00> : vector<2x128xf32>
    %55 = tpu.matmul %51, %9, %cst_24 {dimension_numbers = #tpu.dot_dimension_numbers<[1], [0], [0], [1], [0, 0, 1, 1], [], []>} : vector<2x32xf32>, vector<32x128xf32>, vector<2x128xf32> -> vector<2x128xf32>
    %56 = arith.index_cast %54 : i32 to index
    %c0_25 = arith.constant 0 : index
    %57 = vector.load %arg18[%56, %c0_25] : memref<16x128xf32, #tpu.memory_space<vmem>>, vector<2x128xf32>
    %cst_26 = arith.constant dense<0.000000e+00> : vector<2x128xf32>
    %58 = tpu.matmul %32, %7, %cst_26 {dimension_numbers = #tpu.dot_dimension_numbers<[1], [0], [0], [1], [0, 0, 1, 1], [], []>} : vector<2x32xf32>, vector<32x128xf32>, vector<2x128xf32> -> vector<2x128xf32>
    %59 = arith.addf %57, %58 : vector<2x128xf32>
    %60 = arith.negf %59 : vector<2x128xf32>
    %61 = math.exp %60 : vector<2x128xf32>
    %cst_27 = arith.constant 1.000000e+00 : f32
    %62 = vector.broadcast %cst_27 : f32 to vector<2x128xf32>
    %63 = arith.addf %62, %61 : vector<2x128xf32>
    %64 = arith.divf %62, %63 : vector<2x128xf32>
    %65 = math.tanh %59 : vector<2x128xf32>
    %66 = vector.extract_strided_slice %64 {offsets = [0, 0], sizes = [2, 32], strides = [1, 1]} : vector<2x128xf32> to vector<2x32xf32>
    %67 = vector.extract_strided_slice %64 {offsets = [0, 32], sizes = [2, 32], strides = [1, 1]} : vector<2x128xf32> to vector<2x32xf32>
    %68 = vector.extract_strided_slice %65 {offsets = [0, 64], sizes = [2, 32], strides = [1, 1]} : vector<2x128xf32> to vector<2x32xf32>
    %69 = vector.extract_strided_slice %64 {offsets = [0, 96], sizes = [2, 32], strides = [1, 1]} : vector<2x128xf32> to vector<2x32xf32>
    %70 = arith.mulf %67, %30 : vector<2x32xf32>
    %71 = arith.mulf %66, %68 : vector<2x32xf32>
    %72 = arith.addf %70, %71 : vector<2x32xf32>
    %73 = math.tanh %72 : vector<2x32xf32>
    %74 = arith.mulf %69, %73 : vector<2x32xf32>
    %cst_28 = arith.constant dense<0.000000e+00> : vector<2x128xf32>
    %75 = tpu.matmul %74, %8, %cst_28 {dimension_numbers = #tpu.dot_dimension_numbers<[1], [0], [0], [1], [0, 0, 1, 1], [], []>} : vector<2x32xf32>, vector<32x128xf32>, vector<2x128xf32> -> vector<2x128xf32>
    %76 = arith.addf %55, %75 : vector<2x128xf32>
    %77 = vector.broadcast %10 : vector<1x128xf32> to vector<2x128xf32>
    %78 = arith.addf %76, %77 : vector<2x128xf32>
    %79 = arith.negf %78 : vector<2x128xf32>
    %80 = math.exp %79 : vector<2x128xf32>
    %cst_29 = arith.constant 1.000000e+00 : f32
    %81 = vector.broadcast %cst_29 : f32 to vector<2x128xf32>
    %82 = arith.addf %81, %80 : vector<2x128xf32>
    %83 = arith.divf %81, %82 : vector<2x128xf32>
    %84 = math.tanh %78 : vector<2x128xf32>
    %85 = vector.extract_strided_slice %83 {offsets = [0, 0], sizes = [2, 32], strides = [1, 1]} : vector<2x128xf32> to vector<2x32xf32>
    %86 = vector.extract_strided_slice %83 {offsets = [0, 32], sizes = [2, 32], strides = [1, 1]} : vector<2x128xf32> to vector<2x32xf32>
    %87 = vector.extract_strided_slice %84 {offsets = [0, 64], sizes = [2, 32], strides = [1, 1]} : vector<2x128xf32> to vector<2x32xf32>
    %88 = vector.extract_strided_slice %83 {offsets = [0, 96], sizes = [2, 32], strides = [1, 1]} : vector<2x128xf32> to vector<2x32xf32>
    %89 = arith.mulf %86, %49 : vector<2x32xf32>
    %90 = arith.mulf %85, %87 : vector<2x32xf32>
    %91 = arith.addf %89, %90 : vector<2x32xf32>
    %92 = math.tanh %91 : vector<2x32xf32>
    %93 = arith.mulf %88, %92 : vector<2x32xf32>
    %94 = arith.index_cast %54 : i32 to index
    %c0_30 = arith.constant 0 : index
    %95 = vector.load %arg19[%94, %c0_30] : memref<16x32xf32, #tpu.memory_space<vmem>>, vector<2x32xf32>
    tpu.vector_store %arg19[%94, %c0_30], %93 {strides = array<i32>} : memref<16x32xf32, #tpu.memory_space<vmem>>, vector<2x32xf32>,
    %c2_i32_31 = arith.constant 2 : i32
    %c2_i32_32 = arith.constant 2 : i32
    %96 = arith.muli %c2_i32_31, %c2_i32_32 : i32
    %cst_33 = arith.constant dense<0.000000e+00> : vector<2x128xf32>
    %97 = tpu.matmul %93, %9, %cst_33 {dimension_numbers = #tpu.dot_dimension_numbers<[1], [0], [0], [1], [0, 0, 1, 1], [], []>} : vector<2x32xf32>, vector<32x128xf32>, vector<2x128xf32> -> vector<2x128xf32>
    %98 = arith.index_cast %96 : i32 to index
    %c0_34 = arith.constant 0 : index
    %99 = vector.load %arg18[%98, %c0_34] : memref<16x128xf32, #tpu.memory_space<vmem>>, vector<2x128xf32>
    %cst_35 = arith.constant dense<0.000000e+00> : vector<2x128xf32>
    %100 = tpu.matmul %74, %7, %cst_35 {dimension_numbers = #tpu.dot_dimension_numbers<[1], [0], [0], [1], [0, 0, 1, 1], [], []>} : vector<2x32xf32>, vector<32x128xf32>, vector<2x128xf32> -> vector<2x128xf32>
    %101 = arith.addf %99, %100 : vector<2x128xf32>
    %102 = arith.negf %101 : vector<2x128xf32>
    %103 = math.exp %102 : vector<2x128xf32>
    %cst_36 = arith.constant 1.000000e+00 : f32
    %104 = vector.broadcast %cst_36 : f32 to vector<2x128xf32>
    %105 = arith.addf %104, %103 : vector<2x128xf32>
    %106 = arith.divf %104, %105 : vector<2x128xf32>
    %107 = math.tanh %101 : vector<2x128xf32>
    %108 = vector.extract_strided_slice %106 {offsets = [0, 0], sizes = [2, 32], strides = [1, 1]} : vector<2x128xf32> to vector<2x32xf32>
    %109 = vector.extract_strided_slice %106 {offsets = [0, 32], sizes = [2, 32], strides = [1, 1]} : vector<2x128xf32> to vector<2x32xf32>
    %110 = vector.extract_strided_slice %107 {offsets = [0, 64], sizes = [2, 32], strides = [1, 1]} : vector<2x128xf32> to vector<2x32xf32>
    %111 = vector.extract_strided_slice %106 {offsets = [0, 96], sizes = [2, 32], strides = [1, 1]} : vector<2x128xf32> to vector<2x32xf32>
    %112 = arith.mulf %109, %72 : vector<2x32xf32>
    %113 = arith.mulf %108, %110 : vector<2x32xf32>
    %114 = arith.addf %112, %113 : vector<2x32xf32>
    %115 = math.tanh %114 : vector<2x32xf32>
    %116 = arith.mulf %111, %115 : vector<2x32xf32>
    %cst_37 = arith.constant dense<0.000000e+00> : vector<2x128xf32>
    %117 = tpu.matmul %116, %8, %cst_37 {dimension_numbers = #tpu.dot_dimension_numbers<[1], [0], [0], [1], [0, 0, 1, 1], [], []>} : vector<2x32xf32>, vector<32x128xf32>, vector<2x128xf32> -> vector<2x128xf32>
    %118 = arith.addf %97, %117 : vector<2x128xf32>
    %119 = vector.broadcast %10 : vector<1x128xf32> to vector<2x128xf32>
    %120 = arith.addf %118, %119 : vector<2x128xf32>
    %121 = arith.negf %120 : vector<2x128xf32>
    %122 = math.exp %121 : vector<2x128xf32>
    %cst_38 = arith.constant 1.000000e+00 : f32
    %123 = vector.broadcast %cst_38 : f32 to vector<2x128xf32>
    %124 = arith.addf %123, %122 : vector<2x128xf32>
    %125 = arith.divf %123, %124 : vector<2x128xf32>
    %126 = math.tanh %120 : vector<2x128xf32>
    %127 = vector.extract_strided_slice %125 {offsets = [0, 0], sizes = [2, 32], strides = [1, 1]} : vector<2x128xf32> to vector<2x32xf32>
    %128 = vector.extract_strided_slice %125 {offsets = [0, 32], sizes = [2, 32], strides = [1, 1]} : vector<2x128xf32> to vector<2x32xf32>
    %129 = vector.extract_strided_slice %126 {offsets = [0, 64], sizes = [2, 32], strides = [1, 1]} : vector<2x128xf32> to vector<2x32xf32>
    %130 = vector.extract_strided_slice %125 {offsets = [0, 96], sizes = [2, 32], strides = [1, 1]} : vector<2x128xf32> to vector<2x32xf32>
    %131 = arith.mulf %128, %91 : vector<2x32xf32>
    %132 = arith.mulf %127, %129 : vector<2x32xf32>
    %133 = arith.addf %131, %132 : vector<2x32xf32>
    %134 = math.tanh %133 : vector<2x32xf32>
    %135 = arith.mulf %130, %134 : vector<2x32xf32>
    %136 = arith.index_cast %96 : i32 to index
    %c0_39 = arith.constant 0 : index
    %137 = vector.load %arg19[%136, %c0_39] : memref<16x32xf32, #tpu.memory_space<vmem>>, vector<2x32xf32>
    tpu.vector_store %arg19[%136, %c0_39], %135 {strides = array<i32>} : memref<16x32xf32, #tpu.memory_space<vmem>>, vector<2x32xf32>,
    %c3_i32 = arith.constant 3 : i32
    %c2_i32_40 = arith.constant 2 : i32
    %138 = arith.muli %c3_i32, %c2_i32_40 : i32
    %cst_41 = arith.constant dense<0.000000e+00> : vector<2x128xf32>
    %139 = tpu.matmul %135, %9, %cst_41 {dimension_numbers = #tpu.dot_dimension_numbers<[1], [0], [0], [1], [0, 0, 1, 1], [], []>} : vector<2x32xf32>, vector<32x128xf32>, vector<2x128xf32> -> vector<2x128xf32>
    %140 = arith.index_cast %138 : i32 to index
    %c0_42 = arith.constant 0 : index
    %141 = vector.load %arg18[%140, %c0_42] : memref<16x128xf32, #tpu.memory_space<vmem>>, vector<2x128xf32>
    %cst_43 = arith.constant dense<0.000000e+00> : vector<2x128xf32>
    %142 = tpu.matmul %116, %7, %cst_43 {dimension_numbers = #tpu.dot_dimension_numbers<[1], [0], [0], [1], [0, 0, 1, 1], [], []>} : vector<2x32xf32>, vector<32x128xf32>, vector<2x128xf32> -> vector<2x128xf32>
    %143 = arith.addf %141, %142 : vector<2x128xf32>
    %144 = arith.negf %143 : vector<2x128xf32>
    %145 = math.exp %144 : vector<2x128xf32>
    %cst_44 = arith.constant 1.000000e+00 : f32
    %146 = vector.broadcast %cst_44 : f32 to vector<2x128xf32>
    %147 = arith.addf %146, %145 : vector<2x128xf32>
    %148 = arith.divf %146, %147 : vector<2x128xf32>
    %149 = math.tanh %143 : vector<2x128xf32>
    %150 = vector.extract_strided_slice %148 {offsets = [0, 0], sizes = [2, 32], strides = [1, 1]} : vector<2x128xf32> to vector<2x32xf32>
    %151 = vector.extract_strided_slice %148 {offsets = [0, 32], sizes = [2, 32], strides = [1, 1]} : vector<2x128xf32> to vector<2x32xf32>
    %152 = vector.extract_strided_slice %149 {offsets = [0, 64], sizes = [2, 32], strides = [1, 1]} : vector<2x128xf32> to vector<2x32xf32>
    %153 = vector.extract_strided_slice %148 {offsets = [0, 96], sizes = [2, 32], strides = [1, 1]} : vector<2x128xf32> to vector<2x32xf32>
    %154 = arith.mulf %151, %114 : vector<2x32xf32>
    %155 = arith.mulf %150, %152 : vector<2x32xf32>
    %156 = arith.addf %154, %155 : vector<2x32xf32>
    %157 = math.tanh %156 : vector<2x32xf32>
    %158 = arith.mulf %153, %157 : vector<2x32xf32>
    %cst_45 = arith.constant dense<0.000000e+00> : vector<2x128xf32>
    %159 = tpu.matmul %158, %8, %cst_45 {dimension_numbers = #tpu.dot_dimension_numbers<[1], [0], [0], [1], [0, 0, 1, 1], [], []>} : vector<2x32xf32>, vector<32x128xf32>, vector<2x128xf32> -> vector<2x128xf32>
    %160 = arith.addf %139, %159 : vector<2x128xf32>
    %161 = vector.broadcast %10 : vector<1x128xf32> to vector<2x128xf32>
    %162 = arith.addf %160, %161 : vector<2x128xf32>
    %163 = arith.negf %162 : vector<2x128xf32>
    %164 = math.exp %163 : vector<2x128xf32>
    %cst_46 = arith.constant 1.000000e+00 : f32
    %165 = vector.broadcast %cst_46 : f32 to vector<2x128xf32>
    %166 = arith.addf %165, %164 : vector<2x128xf32>
    %167 = arith.divf %165, %166 : vector<2x128xf32>
    %168 = math.tanh %162 : vector<2x128xf32>
    %169 = vector.extract_strided_slice %167 {offsets = [0, 0], sizes = [2, 32], strides = [1, 1]} : vector<2x128xf32> to vector<2x32xf32>
    %170 = vector.extract_strided_slice %167 {offsets = [0, 32], sizes = [2, 32], strides = [1, 1]} : vector<2x128xf32> to vector<2x32xf32>
    %171 = vector.extract_strided_slice %168 {offsets = [0, 64], sizes = [2, 32], strides = [1, 1]} : vector<2x128xf32> to vector<2x32xf32>
    %172 = vector.extract_strided_slice %167 {offsets = [0, 96], sizes = [2, 32], strides = [1, 1]} : vector<2x128xf32> to vector<2x32xf32>
    %173 = arith.mulf %170, %133 : vector<2x32xf32>
    %174 = arith.mulf %169, %171 : vector<2x32xf32>
    %175 = arith.addf %173, %174 : vector<2x32xf32>
    %176 = math.tanh %175 : vector<2x32xf32>
    %177 = arith.mulf %172, %176 : vector<2x32xf32>
    %178 = arith.index_cast %138 : i32 to index
    %c0_47 = arith.constant 0 : index
    %179 = vector.load %arg19[%178, %c0_47] : memref<16x32xf32, #tpu.memory_space<vmem>>, vector<2x32xf32>
    tpu.vector_store %arg19[%178, %c0_47], %177 {strides = array<i32>} : memref<16x32xf32, #tpu.memory_space<vmem>>, vector<2x32xf32>,
    %c4_i32 = arith.constant 4 : i32
    %c2_i32_48 = arith.constant 2 : i32
    %180 = arith.muli %c4_i32, %c2_i32_48 : i32
    %cst_49 = arith.constant dense<0.000000e+00> : vector<2x128xf32>
    %181 = tpu.matmul %177, %9, %cst_49 {dimension_numbers = #tpu.dot_dimension_numbers<[1], [0], [0], [1], [0, 0, 1, 1], [], []>} : vector<2x32xf32>, vector<32x128xf32>, vector<2x128xf32> -> vector<2x128xf32>
    %182 = arith.index_cast %180 : i32 to index
    %c0_50 = arith.constant 0 : index
    %183 = vector.load %arg18[%182, %c0_50] : memref<16x128xf32, #tpu.memory_space<vmem>>, vector<2x128xf32>
    %cst_51 = arith.constant dense<0.000000e+00> : vector<2x128xf32>
    %184 = tpu.matmul %158, %7, %cst_51 {dimension_numbers = #tpu.dot_dimension_numbers<[1], [0], [0], [1], [0, 0, 1, 1], [], []>} : vector<2x32xf32>, vector<32x128xf32>, vector<2x128xf32> -> vector<2x128xf32>
    %185 = arith.addf %183, %184 : vector<2x128xf32>
    %186 = arith.negf %185 : vector<2x128xf32>
    %187 = math.exp %186 : vector<2x128xf32>
    %cst_52 = arith.constant 1.000000e+00 : f32
    %188 = vector.broadcast %cst_52 : f32 to vector<2x128xf32>
    %189 = arith.addf %188, %187 : vector<2x128xf32>
    %190 = arith.divf %188, %189 : vector<2x128xf32>
    %191 = math.tanh %185 : vector<2x128xf32>
    %192 = vector.extract_strided_slice %190 {offsets = [0, 0], sizes = [2, 32], strides = [1, 1]} : vector<2x128xf32> to vector<2x32xf32>
    %193 = vector.extract_strided_slice %190 {offsets = [0, 32], sizes = [2, 32], strides = [1, 1]} : vector<2x128xf32> to vector<2x32xf32>
    %194 = vector.extract_strided_slice %191 {offsets = [0, 64], sizes = [2, 32], strides = [1, 1]} : vector<2x128xf32> to vector<2x32xf32>
    %195 = vector.extract_strided_slice %190 {offsets = [0, 96], sizes = [2, 32], strides = [1, 1]} : vector<2x128xf32> to vector<2x32xf32>
    %196 = arith.mulf %193, %156 : vector<2x32xf32>
    %197 = arith.mulf %192, %194 : vector<2x32xf32>
    %198 = arith.addf %196, %197 : vector<2x32xf32>
    %199 = math.tanh %198 : vector<2x32xf32>
    %200 = arith.mulf %195, %199 : vector<2x32xf32>
    %cst_53 = arith.constant dense<0.000000e+00> : vector<2x128xf32>
    %201 = tpu.matmul %200, %8, %cst_53 {dimension_numbers = #tpu.dot_dimension_numbers<[1], [0], [0], [1], [0, 0, 1, 1], [], []>} : vector<2x32xf32>, vector<32x128xf32>, vector<2x128xf32> -> vector<2x128xf32>
    %202 = arith.addf %181, %201 : vector<2x128xf32>
    %203 = vector.broadcast %10 : vector<1x128xf32> to vector<2x128xf32>
    %204 = arith.addf %202, %203 : vector<2x128xf32>
    %205 = arith.negf %204 : vector<2x128xf32>
    %206 = math.exp %205 : vector<2x128xf32>
    %cst_54 = arith.constant 1.000000e+00 : f32
    %207 = vector.broadcast %cst_54 : f32 to vector<2x128xf32>
    %208 = arith.addf %207, %206 : vector<2x128xf32>
    %209 = arith.divf %207, %208 : vector<2x128xf32>
    %210 = math.tanh %204 : vector<2x128xf32>
    %211 = vector.extract_strided_slice %209 {offsets = [0, 0], sizes = [2, 32], strides = [1, 1]} : vector<2x128xf32> to vector<2x32xf32>
    %212 = vector.extract_strided_slice %209 {offsets = [0, 32], sizes = [2, 32], strides = [1, 1]} : vector<2x128xf32> to vector<2x32xf32>
    %213 = vector.extract_strided_slice %210 {offsets = [0, 64], sizes = [2, 32], strides = [1, 1]} : vector<2x128xf32> to vector<2x32xf32>
    %214 = vector.extract_strided_slice %209 {offsets = [0, 96], sizes = [2, 32], strides = [1, 1]} : vector<2x128xf32> to vector<2x32xf32>
    %215 = arith.mulf %212, %175 : vector<2x32xf32>
    %216 = arith.mulf %211, %213 : vector<2x32xf32>
    %217 = arith.addf %215, %216 : vector<2x32xf32>
    %218 = math.tanh %217 : vector<2x32xf32>
    %219 = arith.mulf %214, %218 : vector<2x32xf32>
    %220 = arith.index_cast %180 : i32 to index
    %c0_55 = arith.constant 0 : index
    %221 = vector.load %arg19[%220, %c0_55] : memref<16x32xf32, #tpu.memory_space<vmem>>, vector<2x32xf32>
    tpu.vector_store %arg19[%220, %c0_55], %219 {strides = array<i32>} : memref<16x32xf32, #tpu.memory_space<vmem>>, vector<2x32xf32>,
    %c5_i32 = arith.constant 5 : i32
    %c2_i32_56 = arith.constant 2 : i32
    %222 = arith.muli %c5_i32, %c2_i32_56 : i32
    %cst_57 = arith.constant dense<0.000000e+00> : vector<2x128xf32>
    %223 = tpu.matmul %219, %9, %cst_57 {dimension_numbers = #tpu.dot_dimension_numbers<[1], [0], [0], [1], [0, 0, 1, 1], [], []>} : vector<2x32xf32>, vector<32x128xf32>, vector<2x128xf32> -> vector<2x128xf32>
    %224 = arith.index_cast %222 : i32 to index
    %c0_58 = arith.constant 0 : index
    %225 = vector.load %arg18[%224, %c0_58] : memref<16x128xf32, #tpu.memory_space<vmem>>, vector<2x128xf32>
    %cst_59 = arith.constant dense<0.000000e+00> : vector<2x128xf32>
    %226 = tpu.matmul %200, %7, %cst_59 {dimension_numbers = #tpu.dot_dimension_numbers<[1], [0], [0], [1], [0, 0, 1, 1], [], []>} : vector<2x32xf32>, vector<32x128xf32>, vector<2x128xf32> -> vector<2x128xf32>
    %227 = arith.addf %225, %226 : vector<2x128xf32>
    %228 = arith.negf %227 : vector<2x128xf32>
    %229 = math.exp %228 : vector<2x128xf32>
    %cst_60 = arith.constant 1.000000e+00 : f32
    %230 = vector.broadcast %cst_60 : f32 to vector<2x128xf32>
    %231 = arith.addf %230, %229 : vector<2x128xf32>
    %232 = arith.divf %230, %231 : vector<2x128xf32>
    %233 = math.tanh %227 : vector<2x128xf32>
    %234 = vector.extract_strided_slice %232 {offsets = [0, 0], sizes = [2, 32], strides = [1, 1]} : vector<2x128xf32> to vector<2x32xf32>
    %235 = vector.extract_strided_slice %232 {offsets = [0, 32], sizes = [2, 32], strides = [1, 1]} : vector<2x128xf32> to vector<2x32xf32>
    %236 = vector.extract_strided_slice %233 {offsets = [0, 64], sizes = [2, 32], strides = [1, 1]} : vector<2x128xf32> to vector<2x32xf32>
    %237 = vector.extract_strided_slice %232 {offsets = [0, 96], sizes = [2, 32], strides = [1, 1]} : vector<2x128xf32> to vector<2x32xf32>
    %238 = arith.mulf %235, %198 : vector<2x32xf32>
    %239 = arith.mulf %234, %236 : vector<2x32xf32>
    %240 = arith.addf %238, %239 : vector<2x32xf32>
    %241 = math.tanh %240 : vector<2x32xf32>
    %242 = arith.mulf %237, %241 : vector<2x32xf32>
    %cst_61 = arith.constant dense<0.000000e+00> : vector<2x128xf32>
    %243 = tpu.matmul %242, %8, %cst_61 {dimension_numbers = #tpu.dot_dimension_numbers<[1], [0], [0], [1], [0, 0, 1, 1], [], []>} : vector<2x32xf32>, vector<32x128xf32>, vector<2x128xf32> -> vector<2x128xf32>
    %244 = arith.addf %223, %243 : vector<2x128xf32>
    %245 = vector.broadcast %10 : vector<1x128xf32> to vector<2x128xf32>
    %246 = arith.addf %244, %245 : vector<2x128xf32>
    %247 = arith.negf %246 : vector<2x128xf32>
    %248 = math.exp %247 : vector<2x128xf32>
    %cst_62 = arith.constant 1.000000e+00 : f32
    %249 = vector.broadcast %cst_62 : f32 to vector<2x128xf32>
    %250 = arith.addf %249, %248 : vector<2x128xf32>
    %251 = arith.divf %249, %250 : vector<2x128xf32>
    %252 = math.tanh %246 : vector<2x128xf32>
    %253 = vector.extract_strided_slice %251 {offsets = [0, 0], sizes = [2, 32], strides = [1, 1]} : vector<2x128xf32> to vector<2x32xf32>
    %254 = vector.extract_strided_slice %251 {offsets = [0, 32], sizes = [2, 32], strides = [1, 1]} : vector<2x128xf32> to vector<2x32xf32>
    %255 = vector.extract_strided_slice %252 {offsets = [0, 64], sizes = [2, 32], strides = [1, 1]} : vector<2x128xf32> to vector<2x32xf32>
    %256 = vector.extract_strided_slice %251 {offsets = [0, 96], sizes = [2, 32], strides = [1, 1]} : vector<2x128xf32> to vector<2x32xf32>
    %257 = arith.mulf %254, %217 : vector<2x32xf32>
    %258 = arith.mulf %253, %255 : vector<2x32xf32>
    %259 = arith.addf %257, %258 : vector<2x32xf32>
    %260 = math.tanh %259 : vector<2x32xf32>
    %261 = arith.mulf %256, %260 : vector<2x32xf32>
    %262 = arith.index_cast %222 : i32 to index
    %c0_63 = arith.constant 0 : index
    %263 = vector.load %arg19[%262, %c0_63] : memref<16x32xf32, #tpu.memory_space<vmem>>, vector<2x32xf32>
    tpu.vector_store %arg19[%262, %c0_63], %261 {strides = array<i32>} : memref<16x32xf32, #tpu.memory_space<vmem>>, vector<2x32xf32>,
    %c6_i32 = arith.constant 6 : i32
    %c2_i32_64 = arith.constant 2 : i32
    %264 = arith.muli %c6_i32, %c2_i32_64 : i32
    %cst_65 = arith.constant dense<0.000000e+00> : vector<2x128xf32>
    %265 = tpu.matmul %261, %9, %cst_65 {dimension_numbers = #tpu.dot_dimension_numbers<[1], [0], [0], [1], [0, 0, 1, 1], [], []>} : vector<2x32xf32>, vector<32x128xf32>, vector<2x128xf32> -> vector<2x128xf32>
    %266 = arith.index_cast %264 : i32 to index
    %c0_66 = arith.constant 0 : index
    %267 = vector.load %arg18[%266, %c0_66] : memref<16x128xf32, #tpu.memory_space<vmem>>, vector<2x128xf32>
    %cst_67 = arith.constant dense<0.000000e+00> : vector<2x128xf32>
    %268 = tpu.matmul %242, %7, %cst_67 {dimension_numbers = #tpu.dot_dimension_numbers<[1], [0], [0], [1], [0, 0, 1, 1], [], []>} : vector<2x32xf32>, vector<32x128xf32>, vector<2x128xf32> -> vector<2x128xf32>
    %269 = arith.addf %267, %268 : vector<2x128xf32>
    %270 = arith.negf %269 : vector<2x128xf32>
    %271 = math.exp %270 : vector<2x128xf32>
    %cst_68 = arith.constant 1.000000e+00 : f32
    %272 = vector.broadcast %cst_68 : f32 to vector<2x128xf32>
    %273 = arith.addf %272, %271 : vector<2x128xf32>
    %274 = arith.divf %272, %273 : vector<2x128xf32>
    %275 = math.tanh %269 : vector<2x128xf32>
    %276 = vector.extract_strided_slice %274 {offsets = [0, 0], sizes = [2, 32], strides = [1, 1]} : vector<2x128xf32> to vector<2x32xf32>
    %277 = vector.extract_strided_slice %274 {offsets = [0, 32], sizes = [2, 32], strides = [1, 1]} : vector<2x128xf32> to vector<2x32xf32>
    %278 = vector.extract_strided_slice %275 {offsets = [0, 64], sizes = [2, 32], strides = [1, 1]} : vector<2x128xf32> to vector<2x32xf32>
    %279 = vector.extract_strided_slice %274 {offsets = [0, 96], sizes = [2, 32], strides = [1, 1]} : vector<2x128xf32> to vector<2x32xf32>
    %280 = arith.mulf %277, %240 : vector<2x32xf32>
    %281 = arith.mulf %276, %278 : vector<2x32xf32>
    %282 = arith.addf %280, %281 : vector<2x32xf32>
    %283 = math.tanh %282 : vector<2x32xf32>
    %284 = arith.mulf %279, %283 : vector<2x32xf32>
    %cst_69 = arith.constant dense<0.000000e+00> : vector<2x128xf32>
    %285 = tpu.matmul %284, %8, %cst_69 {dimension_numbers = #tpu.dot_dimension_numbers<[1], [0], [0], [1], [0, 0, 1, 1], [], []>} : vector<2x32xf32>, vector<32x128xf32>, vector<2x128xf32> -> vector<2x128xf32>
    %286 = arith.addf %265, %285 : vector<2x128xf32>
    %287 = vector.broadcast %10 : vector<1x128xf32> to vector<2x128xf32>
    %288 = arith.addf %286, %287 : vector<2x128xf32>
    %289 = arith.negf %288 : vector<2x128xf32>
    %290 = math.exp %289 : vector<2x128xf32>
    %cst_70 = arith.constant 1.000000e+00 : f32
    %291 = vector.broadcast %cst_70 : f32 to vector<2x128xf32>
    %292 = arith.addf %291, %290 : vector<2x128xf32>
    %293 = arith.divf %291, %292 : vector<2x128xf32>
    %294 = math.tanh %288 : vector<2x128xf32>
    %295 = vector.extract_strided_slice %293 {offsets = [0, 0], sizes = [2, 32], strides = [1, 1]} : vector<2x128xf32> to vector<2x32xf32>
    %296 = vector.extract_strided_slice %293 {offsets = [0, 32], sizes = [2, 32], strides = [1, 1]} : vector<2x128xf32> to vector<2x32xf32>
    %297 = vector.extract_strided_slice %294 {offsets = [0, 64], sizes = [2, 32], strides = [1, 1]} : vector<2x128xf32> to vector<2x32xf32>
    %298 = vector.extract_strided_slice %293 {offsets = [0, 96], sizes = [2, 32], strides = [1, 1]} : vector<2x128xf32> to vector<2x32xf32>
    %299 = arith.mulf %296, %259 : vector<2x32xf32>
    %300 = arith.mulf %295, %297 : vector<2x32xf32>
    %301 = arith.addf %299, %300 : vector<2x32xf32>
    %302 = math.tanh %301 : vector<2x32xf32>
    %303 = arith.mulf %298, %302 : vector<2x32xf32>
    %304 = arith.index_cast %264 : i32 to index
    %c0_71 = arith.constant 0 : index
    %305 = vector.load %arg19[%304, %c0_71] : memref<16x32xf32, #tpu.memory_space<vmem>>, vector<2x32xf32>
    tpu.vector_store %arg19[%304, %c0_71], %303 {strides = array<i32>} : memref<16x32xf32, #tpu.memory_space<vmem>>, vector<2x32xf32>,
    %c7_i32 = arith.constant 7 : i32
    %c2_i32_72 = arith.constant 2 : i32
    %306 = arith.muli %c7_i32, %c2_i32_72 : i32
    %cst_73 = arith.constant dense<0.000000e+00> : vector<2x128xf32>
    %307 = tpu.matmul %303, %9, %cst_73 {dimension_numbers = #tpu.dot_dimension_numbers<[1], [0], [0], [1], [0, 0, 1, 1], [], []>} : vector<2x32xf32>, vector<32x128xf32>, vector<2x128xf32> -> vector<2x128xf32>
    %308 = arith.index_cast %306 : i32 to index
    %c0_74 = arith.constant 0 : index
    %309 = vector.load %arg18[%308, %c0_74] : memref<16x128xf32, #tpu.memory_space<vmem>>, vector<2x128xf32>
    %cst_75 = arith.constant dense<0.000000e+00> : vector<2x128xf32>
    %310 = tpu.matmul %284, %7, %cst_75 {dimension_numbers = #tpu.dot_dimension_numbers<[1], [0], [0], [1], [0, 0, 1, 1], [], []>} : vector<2x32xf32>, vector<32x128xf32>, vector<2x128xf32> -> vector<2x128xf32>
    %311 = arith.addf %309, %310 : vector<2x128xf32>
    %312 = arith.negf %311 : vector<2x128xf32>
    %313 = math.exp %312 : vector<2x128xf32>
    %cst_76 = arith.constant 1.000000e+00 : f32
    %314 = vector.broadcast %cst_76 : f32 to vector<2x128xf32>
    %315 = arith.addf %314, %313 : vector<2x128xf32>
    %316 = arith.divf %314, %315 : vector<2x128xf32>
    %317 = math.tanh %311 : vector<2x128xf32>
    %318 = vector.extract_strided_slice %316 {offsets = [0, 0], sizes = [2, 32], strides = [1, 1]} : vector<2x128xf32> to vector<2x32xf32>
    %319 = vector.extract_strided_slice %316 {offsets = [0, 32], sizes = [2, 32], strides = [1, 1]} : vector<2x128xf32> to vector<2x32xf32>
    %320 = vector.extract_strided_slice %317 {offsets = [0, 64], sizes = [2, 32], strides = [1, 1]} : vector<2x128xf32> to vector<2x32xf32>
    %321 = vector.extract_strided_slice %316 {offsets = [0, 96], sizes = [2, 32], strides = [1, 1]} : vector<2x128xf32> to vector<2x32xf32>
    %322 = arith.mulf %319, %282 : vector<2x32xf32>
    %323 = arith.mulf %318, %320 : vector<2x32xf32>
    %324 = arith.addf %322, %323 : vector<2x32xf32>
    %325 = math.tanh %324 : vector<2x32xf32>
    %326 = arith.mulf %321, %325 : vector<2x32xf32>
    %cst_77 = arith.constant dense<0.000000e+00> : vector<2x128xf32>
    %327 = tpu.matmul %326, %8, %cst_77 {dimension_numbers = #tpu.dot_dimension_numbers<[1], [0], [0], [1], [0, 0, 1, 1], [], []>} : vector<2x32xf32>, vector<32x128xf32>, vector<2x128xf32> -> vector<2x128xf32>
    %328 = arith.addf %307, %327 : vector<2x128xf32>
    %329 = vector.broadcast %10 : vector<1x128xf32> to vector<2x128xf32>
    %330 = arith.addf %328, %329 : vector<2x128xf32>
    %331 = arith.negf %330 : vector<2x128xf32>
    %332 = math.exp %331 : vector<2x128xf32>
    %cst_78 = arith.constant 1.000000e+00 : f32
    %333 = vector.broadcast %cst_78 : f32 to vector<2x128xf32>
    %334 = arith.addf %333, %332 : vector<2x128xf32>
    %335 = arith.divf %333, %334 : vector<2x128xf32>
    %336 = math.tanh %330 : vector<2x128xf32>
    %337 = vector.extract_strided_slice %335 {offsets = [0, 0], sizes = [2, 32], strides = [1, 1]} : vector<2x128xf32> to vector<2x32xf32>
    %338 = vector.extract_strided_slice %335 {offsets = [0, 32], sizes = [2, 32], strides = [1, 1]} : vector<2x128xf32> to vector<2x32xf32>
    %339 = vector.extract_strided_slice %336 {offsets = [0, 64], sizes = [2, 32], strides = [1, 1]} : vector<2x128xf32> to vector<2x32xf32>
    %340 = vector.extract_strided_slice %335 {offsets = [0, 96], sizes = [2, 32], strides = [1, 1]} : vector<2x128xf32> to vector<2x32xf32>
    %341 = arith.mulf %338, %301 : vector<2x32xf32>
    %342 = arith.mulf %337, %339 : vector<2x32xf32>
    %343 = arith.addf %341, %342 : vector<2x32xf32>
    %344 = math.tanh %343 : vector<2x32xf32>
    %345 = arith.mulf %340, %344 : vector<2x32xf32>
    %346 = arith.index_cast %306 : i32 to index
    %c0_79 = arith.constant 0 : index
    %347 = vector.load %arg19[%346, %c0_79] : memref<16x32xf32, #tpu.memory_space<vmem>>, vector<2x32xf32>
    tpu.vector_store %arg19[%346, %c0_79], %345 {strides = array<i32>} : memref<16x32xf32, #tpu.memory_space<vmem>>, vector<2x32xf32>,
    %c8_i32 = arith.constant 8 : i32
    %c0_80 = arith.constant 0 : index
    %c0_81 = arith.constant 0 : index
    %348 = vector.load %arg19[%c0_80, %c0_81] : memref<16x32xf32, #tpu.memory_space<vmem>>, vector<16x32xf32>
    %c0_82 = arith.constant 0 : index
    %c0_83 = arith.constant 0 : index
    %349 = vector.load %arg7[%c0_82, %c0_83] : memref<32x32xf32, #tpu.memory_space<vmem>>, vector<32x32xf32>
    %cst_84 = arith.constant dense<0.000000e+00> : vector<16x32xf32>
    %350 = tpu.matmul %348, %349, %cst_84 {dimension_numbers = #tpu.dot_dimension_numbers<[1], [0], [0], [1], [0, 0, 1, 1], [], []>} : vector<16x32xf32>, vector<32x32xf32>, vector<16x32xf32> -> vector<16x32xf32>
    %c0_85 = arith.constant 0 : index
    %c0_86 = arith.constant 0 : index
    %351 = vector.load %arg8[%c0_85, %c0_86] : memref<1x32xf32, #tpu.memory_space<vmem>>, vector<1x32xf32>
    %352 = vector.broadcast %351 : vector<1x32xf32> to vector<16x32xf32>
    %353 = arith.addf %350, %352 : vector<16x32xf32>
    %354 = math.tanh %353 : vector<16x32xf32>
    %c0_87 = arith.constant 0 : index
    %c0_88 = arith.constant 0 : index
    %355 = vector.load %arg9[%c0_87, %c0_88] : memref<1x32xf32, #tpu.memory_space<vmem>>, vector<1x32xf32>
    %356 = vector.broadcast %355 : vector<1x32xf32> to vector<16x32xf32>
    %357 = arith.mulf %354, %356 : vector<16x32xf32>
    %cst_89 = arith.constant dense<0.000000e+00> : vector<16xf32>
    %358 = vector.multi_reduction <add>, %357, %cst_89 [1] : vector<16x32xf32> to vector<16xf32>
    %359 = vector.shape_cast %358 : vector<16xf32> to vector<16x1xf32>
    %360 = vector.shape_cast %359 : vector<16x1xf32> to vector<1x16x1xf32>
    %cst_90 = arith.constant dense<0xFF800000> : vector<1xf32>
    %361 = vector.multi_reduction <maximumf>, %360, %cst_90 [1, 2] : vector<1x16x1xf32> to vector<1xf32>
    %362 = vector.shape_cast %361 : vector<1xf32> to vector<1x1x1xf32>
    %363 = vector.extract %362[0, 0, 0] : f32 from vector<1x1x1xf32>
    %364 = vector.broadcast %363 : f32 to vector<1x1xf32>
    %365 = vector.broadcast %364 : vector<1x1xf32> to vector<16x1xf32>
    %366 = arith.subf %359, %365 : vector<16x1xf32>
    %367 = math.exp %366 : vector<16x1xf32>
    %c0_91 = arith.constant 0 : index
    %c0_92 = arith.constant 0 : index
    %368 = vector.load %arg10[%c0_91, %c0_92] : memref<16x2xf32, #tpu.memory_space<vmem>>, vector<16x2xf32>
    %369 = vector.broadcast %367 : vector<16x1xf32> to vector<16x2xf32>
    %370 = arith.mulf %369, %368 : vector<16x2xf32>
    %cst_93 = arith.constant dense<0.000000e+00> : vector<2xf32>
    %371 = vector.multi_reduction <add>, %370, %cst_93 [0] : vector<16x2xf32> to vector<2xf32>
    %372 = vector.shape_cast %371 : vector<2xf32> to vector<1x2xf32>
    %373 = vector.broadcast %372 : vector<1x2xf32> to vector<16x2xf32>
    %374 = arith.mulf %368, %373 : vector<16x2xf32>
    %cst_94 = arith.constant dense<0.000000e+00> : vector<16xf32>
    %375 = vector.multi_reduction <add>, %374, %cst_94 [1] : vector<16x2xf32> to vector<16xf32>
    %376 = vector.shape_cast %375 : vector<16xf32> to vector<16x1xf32>
    %377 = arith.divf %367, %376 : vector<16x1xf32>
    %c0_95 = arith.constant 0 : index
    %c0_96 = arith.constant 0 : index
    %378 = vector.load %arg17[%c0_95, %c0_96] : memref<16x1xf32, #tpu.memory_space<vmem>>, vector<16x1xf32>
    tpu.vector_store %arg17[%c0_95, %c0_96], %377 {strides = array<i32>} : memref<16x1xf32, #tpu.memory_space<vmem>>, vector<16x1xf32>,
    %c0_97 = arith.constant 0 : index
    %c0_98 = arith.constant 0 : index
    %379 = vector.load %arg11[%c0_97, %c0_98] : memref<2x16xf32, #tpu.memory_space<vmem>>, vector<2x16xf32>
    %380 = vector.broadcast %377 : vector<16x1xf32> to vector<16x32xf32>
    %381 = arith.mulf %380, %348 : vector<16x32xf32>
    %cst_99 = arith.constant dense<0.000000e+00> : vector<2x32xf32>
    %382 = tpu.matmul %379, %381, %cst_99 {dimension_numbers = #tpu.dot_dimension_numbers<[1], [0], [0], [1], [0, 0, 1, 1], [], []>} : vector<2x16xf32>, vector<16x32xf32>, vector<2x32xf32> -> vector<2x32xf32>
    %c0_100 = arith.constant 0 : index
    %c0_101 = arith.constant 0 : index
    %383 = vector.load %arg12[%c0_100, %c0_101] : memref<32x64xf32, #tpu.memory_space<vmem>>, vector<32x64xf32>
    %cst_102 = arith.constant dense<0.000000e+00> : vector<2x64xf32>
    %384 = tpu.matmul %382, %383, %cst_102 {dimension_numbers = #tpu.dot_dimension_numbers<[1], [0], [0], [1], [0, 0, 1, 1], [], []>} : vector<2x32xf32>, vector<32x64xf32>, vector<2x64xf32> -> vector<2x64xf32>
    %c0_103 = arith.constant 0 : index
    %c0_104 = arith.constant 0 : index
    %385 = vector.load %arg13[%c0_103, %c0_104] : memref<1x64xf32, #tpu.memory_space<vmem>>, vector<1x64xf32>
    %386 = vector.broadcast %385 : vector<1x64xf32> to vector<2x64xf32>
    %387 = arith.addf %384, %386 : vector<2x64xf32>
    %cst_105 = arith.constant 0.000000e+00 : f32
    %388 = vector.broadcast %cst_105 : f32 to vector<2x64xf32>
    %389 = arith.maximumf %387, %388 : vector<2x64xf32>
    %c0_106 = arith.constant 0 : index
    %c0_107 = arith.constant 0 : index
    %390 = vector.load %arg14[%c0_106, %c0_107] : memref<64x1xf32, #tpu.memory_space<vmem>>, vector<64x1xf32>
    %cst_108 = arith.constant dense<0.000000e+00> : vector<2x1xf32>
    %391 = tpu.matmul %389, %390, %cst_108 {dimension_numbers = #tpu.dot_dimension_numbers<[1], [0], [0], [1], [0, 0, 1, 1], [], []>} : vector<2x64xf32>, vector<64x1xf32>, vector<2x1xf32> -> vector<2x1xf32>
    %c0_109 = arith.constant 0 : index
    %c0_110 = arith.constant 0 : index
    %392 = vector.load %arg15[%c0_109, %c0_110] : memref<1x1xf32, #tpu.memory_space<vmem>>, vector<1x1xf32>
    %393 = vector.broadcast %392 : vector<1x1xf32> to vector<2x1xf32>
    %394 = arith.addf %391, %393 : vector<2x1xf32>
    %c0_111 = arith.constant 0 : index
    %c0_112 = arith.constant 0 : index
    %395 = vector.load %arg16[%c0_111, %c0_112] : memref<2x1xf32, #tpu.memory_space<vmem>>, vector<2x1xf32>
    tpu.vector_store %arg16[%c0_111, %c0_112], %394 {strides = array<i32>} : memref<2x1xf32, #tpu.memory_space<vmem>>, vector<2x1xf32>,
    return
  }
}

</mosaic_0001>

<bundles_post_ra>
// kernel: forward.1
= control target key start
LH: loop header
LB: loop body
LE: loop exit
PB: predicated region body
PF: predicated region fallthrough
CT: control target
= control target key end

     0   :  { %v3497_v2 = vmov 0.0   ;;  %vm3498_vm0 = vmmov 0   ;;  %vm173_vm1 = vcmask 261120   ;;  %vm452_vm2 = vcmask 254976   ;;  %s4261_s1 = inlined_call_operand.vmem [shape: f32[128,128], index: 1, kind: input, shape index: {}]   ;;  %s4262_s0 = inlined_call_operand.vmem [shape: f32[16,128], index: 0, kind: input, shape index: {}]   ;;  %s4263_s2 = inlined_call_operand.vmem [shape: f32[32,128], index: 2, kind: input, shape index: {}]   ;;  %s4264_s3 = inlined_call_operand.vmem [shape: f32[1,128], index: 3, kind: input, shape index: {}]   ;;  %s4265_s4 = inlined_call_operand.vmem [shape: f32[32,128], index: 4, kind: input, shape index: {}]   ;;  %s4266_s5 = inlined_call_operand.vmem [shape: f32[32,128], index: 5, kind: input, shape index: {}]   ;;  %s4267_s6 = inlined_call_operand.vmem [shape: f32[1,128], index: 6, kind: input, shape index: {}]   ;;  %s4268_s7 = inlined_call_operand.vmem [shape: f32[32,32], index: 7, kind: input, shape index: {}]   ;;  %s4269_s8 = inlined_call_operand.vmem [shape: f32[1,32], index: 8, kind: input, shape index: {}]   ;;  %s4270_s9 = inlined_call_operand.vmem [shape: f32[1,32], index: 9, kind: input, shape index: {}]   ;;  %s4271_s10 = inlined_call_operand.vmem [shape: f32[16,2], index: 10, kind: input, shape index: {}]   ;;  %s4272_s17 = inlined_call_operand.vmem [shape: f32[16,1], index: 17, kind: output, shape index: {1}]   ;;  %s4273_s11 = inlined_call_operand.vmem [shape: f32[2,16], index: 11, kind: input, shape index: {}]   ;;  %s4274_s12 = inlined_call_operand.vmem [shape: f32[32,64], index: 12, kind: input, shape index: {}]   ;;  %s4275_s14 = inlined_call_operand.vmem [shape: f32[64,1], index: 14, kind: input, shape index: {}]   ;;  %s4276_s15 = inlined_call_operand.<no memory space> [shape: f32[1,1], index: 15, kind: input, shape index: {}]   ;;  %s4277_s13 = inlined_call_operand.vmem [shape: f32[1,64], index: 13, kind: input, shape index: {}]   ;;  %s4278_s16 = inlined_call_operand.vmem [shape: f32[2,1], index: 16, kind: output, shape index: {0}]  }
   0x1   :  { %4281 = sst [smem:[#allocation5_spill]] %s4261_s1  ;;  %3026 = vmatprep.subr.mxu1 %v3497_v2  ;;  %3034 = vmatprep.mubr.msk.f32.mxu1 %vm3498_vm0, %v3497_v2  ;;  %v3615_v7 = vld [vmem:[%s4263_s2 + $0x18] sm:$0xff]  ;;  %v3620_v8 = vld [vmem:[%s4263_s2 + $0x10] sm:$0xff]  ;;  %v3630_v10 = vld [vmem:[%s4263_s2 + $0x8] sm:$0xff]  ;;  %s3499_s1 = smov 64   ;;  %vm2495_vm3 = vcmask 15360  }
   0x2   :  { %4282 = sst [smem:[#allocation6_spill]] %s4262_s0  ;;  %3027 = vmatpush3.msra.mxu1 %v3615_v7  ;;  %v3640_v12 = vld [vmem:[%s4263_s2] sm:$0xff]  ;;  %v3701_v42 = vld [vmem:[%s4265_s4 + $0x18] sm:$0xff]  ;;  %v3706_v43 = vld [vmem:[%s4265_s4 + $0x10] sm:$0xff]  ;;  %vm2517_vm4 = vcmask 7168   ;;  %vm2523_vm5 = vcmask 130048  }
   0x3   :  { %s4283_s26 = sld [smem:[#allocation5_spill]]  ;;  %3028 = vmatprep.subr.mxu1 %v3497_v2  ;;  %v2781_v25 = vld [vmem:[%s4264_s3] ss:$0 sm:$0xff]  ;;  %s3500_s3 = smov 32   ;;  %v3713_v44 = vld [vmem:[%s4265_s4 + $0x8] sm:$0xff]  ;;  %v3731_v49 = vld [vmem:[%s4266_s5 + $0x18] sm:$0xff] }
   0x4   :  { %s4284_s20 = sld [smem:[#allocation6_spill]]  ;;  %3029 = vmatpush3.msra.mxu1 %v3620_v8  ;;  %v3720_v45 = vld [vmem:[%s4265_s4] sm:$0xff]  ;;  %v3737_v51 = vld [vmem:[%s4266_s5 + $0x10] sm:$0xff]  ;;  %v3746_v52 = vld [vmem:[%s4266_s5 + $0x8] sm:$0xff]  ;;  %vm2697_vm6 = vcmask 523264   ;;  %vm2771_vm7 = vcmask 1024  }
   0x5   :  { %3030 = vmatprep.subr.mxu1 %v3497_v2  ;;  %v3753_v53 = vld [vmem:[%s4266_s5] sm:$0xff] }
   0x6   :  { %3031 = vmatpush3.msra.mxu1 %v3630_v10  ;;  %v3784_v56 = vld [vmem:[%s4267_s6] ss:$0 sm:$0xff] }
   0x7   :  { %3032 = vmatprep.subr.mxu1 %v3497_v2 }
   0x8   :  { %3033 = vmatpush3.msra.mxu1 %v3640_v12 }
   0x9   :  { %v74_v0 = vld [vmem:[%s4283_s26 + $0x78] sm:$0xff]  ;;  %v73_v1 = vld [vmem:[%s4283_s26 + $0x70] sm:$0xff]  ;;  %v72_v3 = vld [vmem:[%s4283_s26 + $0x68] sm:$0xff]  ;;  %3035 = vmatmul.mubr.f32.vlgmr.msra.gmra.mxu1 %v3497_v2  ;;  %3037 = vmatprep.subr.mxu1 %v3497_v2 }
   0xa   :  { %2991 = vmatprep.subr.mxu0 %v74_v0  ;;  %v71_v4 = vld [vmem:[%s4283_s26 + $0x60] sm:$0xff]  ;;  %v70_v6 = vld [vmem:[%s4283_s26 + $0x58] sm:$0xff]  ;;  %v69_v9 = vld [vmem:[%s4283_s26 + $0x50] sm:$0xff]  ;;  %3045 = vmatprep.mubr.msk.f32.mxu1 %vm3498_vm0, %v3497_v2 }
   0xb   :  { %2992 = vmatpush3.msra.mxu0 %v74_v0  ;;  %v57_v5 = vld [vmem:[%s4284_s20] sm:$0xff]  ;;  %v68_v11 = vld [vmem:[%s4283_s26 + $0x48] sm:$0xff]  ;;  %v66_v14 = vld [vmem:[%s4283_s26 + $0x38] sm:$0xff]  ;;  %3038 = vmatpush3.msra.mxu1 %v3701_v42 }
   0xc   :  { %2993 = vmatprep.subr.mxu0 %v73_v1  ;;  %3023 = vmatprep.mubr.f32.mxu0 %v57_v5  ;;  %v67_v13 = vld [vmem:[%s4283_s26 + $0x40] sm:$0xff]  ;;  %v65_v15 = vld [vmem:[%s4283_s26 + $0x30] sm:$0xff]  ;;  %v64_v16 = vld [vmem:[%s4283_s26 + $0x28] sm:$0xff] }
   0xd   :  { %2994 = vmatpush3.msra.mxu0 %v73_v1  ;;  %v63_v17 = vld [vmem:[%s4283_s26 + $0x20] sm:$0xff]  ;;  %v62_v18 = vld [vmem:[%s4283_s26 + $0x18] sm:$0xff]  ;;  %v61_v19 = vld [vmem:[%s4283_s26 + $0x10] sm:$0xff]  ;;  %3039 = vmatprep.subr.mxu1 %v3497_v2 }
   0xe   :  { %2995 = vmatprep.subr.mxu0 %v72_v3  ;;  %v60_v20 = vld [vmem:[%s4283_s26 + $0x8] sm:$0xff]  ;;  %v59_v21 = vld [vmem:[%s4283_s26] sm:$0xff]  ;;  %3040 = vmatpush3.msra.mxu1 %v3706_v43 }
   0xf   :  { %2996 = vmatpush3.msra.mxu0 %v72_v3  ;;  %v58_v22 = vld [vmem:[%s4284_s20 + $0x8] sm:$0xff]  ;;  %3041 = vmatprep.subr.mxu1 %v3497_v2 }
  0x10   :  { %2997 = vmatprep.subr.mxu0 %v71_v4  ;;  %3042 = vmatpush3.msra.mxu1 %v3713_v44 }
  0x11   :  { %2998 = vmatpush3.msra.mxu0 %v71_v4  ;;  %3043 = vmatprep.subr.mxu1 %v3497_v2 }
  0x12   :  { %2999 = vmatprep.subr.mxu0 %v70_v6  ;;  %3044 = vmatpush3.msra.mxu1 %v3720_v45 }
  0x13   :  { %3000 = vmatpush3.msra.mxu0 %v70_v6  ;;  %3048 = vmatprep.subr.mxu1 %v3497_v2 }
  0x14   :  { %3001 = vmatprep.subr.mxu0 %v69_v9 }
  0x15   :  { %3002 = vmatpush3.msra.mxu0 %v69_v9 }
  0x16   :  { %3003 = vmatprep.subr.mxu0 %v68_v11 }
  0x17   :  { %3004 = vmatpush3.msra.mxu0 %v68_v11 }
  0x18   :  { %3005 = vmatprep.subr.mxu0 %v67_v13 }
  0x19   :  { %3006 = vmatpush3.msra.mxu0 %v67_v13 }
  0x1a   :  { %3007 = vmatprep.subr.mxu0 %v66_v14 }
  0x1b   :  { %3008 = vmatpush3.msra.mxu0 %v66_v14 }
  0x1c   :  { %3009 = vmatprep.subr.mxu0 %v65_v15 }
  0x1d   :  { %3010 = vmatpush3.msra.mxu0 %v65_v15 }
  0x1e   :  { %3011 = vmatprep.subr.mxu0 %v64_v16 }
  0x1f   :  { %3012 = vmatpush3.msra.mxu0 %v64_v16 }
  0x20   :  { %3013 = vmatprep.subr.mxu0 %v63_v17 }
  0x21   :  { %3014 = vmatpush3.msra.mxu0 %v63_v17 }
  0x22   :  { %3015 = vmatprep.subr.mxu0 %v62_v18 }
  0x23   :  { %3016 = vmatpush3.msra.mxu0 %v62_v18 }
  0x24   :  { %3017 = vmatprep.subr.mxu0 %v61_v19 }
  0x25   :  { %3018 = vmatpush3.msra.mxu0 %v61_v19 }
  0x26   :  { %3019 = vmatprep.subr.mxu0 %v60_v20 }
  0x27   :  { %3020 = vmatpush3.msra.mxu0 %v60_v20 }
  0x28   :  { %3021 = vmatprep.subr.mxu0 %v59_v21 }
  0x29   :  { %3022 = vmatpush3.msra.mxu0 %v59_v21 }
  0x2a   :  { %3024 = vmatmul.mubr.f32.vlgmr.msra.gmra.mxu0 %v58_v22  ;;  %3092 = vmatprep.subr.mxu0 %v3497_v2 }
  0x2b   :  { %3093 = vmatpush3.msra.mxu0 %v3615_v7  ;;  %3100 = vmatprep.mubr.msk.f32.mxu0 %vm3498_vm0, %v3497_v2 }
  0x2c   :  { %3094 = vmatprep.subr.mxu0 %v3497_v2 }
  0x2d   :  { %3095 = vmatpush3.msra.mxu0 %v3620_v8 }
  0x2e   :  { %3096 = vmatprep.subr.mxu0 %v3497_v2 }
  0x2f   :  { %3097 = vmatpush3.msra.mxu0 %v3630_v10 }
  0x30   :  { %3098 = vmatprep.subr.mxu0 %v3497_v2 }
  0x31   :  { %3099 = vmatpush3.msra.mxu0 %v3640_v12 }
  0x32   :  { %3114 = vmatprep.subr.mxu0 %v3497_v2 }
  0xc9   :  { %v243_v23 = vpop.f32.mrf.mxu1 }
  0xcb   :  { %v3036_v24 = vpop.f32.mrf.mxu1 }
  0xea   :  { %v3025_v26 = vpop.f32.mrf.mxu0 }
  0xeb   :  { %v154_v27 = vadd.f32 %v3025_v26, %v2781_v25 }
  0xec   :  { %v148_v28 = vpop.f32.mrf.mxu0 }
  0xed   :  { %158 = vst [vmem:[#allocation2 + $0x8] sm:$0xff] %v154_v27  ;;  %v149_v29 = vadd.f32 %v2781_v25, %v148_v28 }
  0xef   :  { %157 = vst [vmem:[#allocation2] sm:$0xff] %v149_v29 }
  0xf6   :  { %v172_v30 = vld [vmem:[#allocation2] sm:$0x3]  ;;  %v454_v61 = vld [vmem:[#allocation2 + $0x2] sm:$0x3] }
  0xf7   :  { %v247_v31 = vadd.f32 %v243_v23, %v172_v30 }
  0xf9   :  { %3344 = vtanh.f32 %v247_v31  ;;  %v2782_v33 = vmul.f32 -1.442695, %v247_v31 }
  0xfb   :  { %3346 = vpow2.f32 %v2782_v33 }
 0x106   :  { %v3345_v32 = vpop.eup %3344 }
 0x107   :  { %257 = vrot.lane.b32.xlu0 %v3345_v32, %s3499_s1 }
 0x108   :  { %v3347_v34 = vpop.eup %3346 }
 0x109   :  { %v251_v35 = vadd.f32 1.0, %v3347_v34 }
 0x10b   :  { %3348 = vrcp.f32 %v251_v35  ;;  %v727_v35 = vld [vmem:[#allocation2 + $0x4] sm:$0x3] }
 0x118   :  { %v3349_v36 = vpop.eup %3348 }
 0x119   :  { %v255_v39 = vmul.f32 0.0, %v3349_v36 }
 0x179   :  { %v258_v37 = vpop.permute.xlu0 %257 }
 0x17a   :  { %v260_v38 = vmul.f32 %v3349_v36, %v258_v37 }
 0x17c   :  { %262 = vrot.lane.b32.xlu0 %v260_v38, %s3500_s3 }
 0x1ee   :  { %v263_v40 = vpop.permute.xlu0 %262 }
 0x1ef   :  { %v3695_v41 = vadd.f32 %v263_v40, %v255_v39 }
 0x1f1   :  { %3350 = vtanh.f32 %v3695_v41 }
 0x1fe   :  { %v3351_v46 = vpop.eup %3350 }
 0x1ff   :  { %268 = vrot.lane.b32.xlu1 %v3351_v46, %s3499_s1 }
 0x271   :  { %v269_v47 = vpop.permute.xlu1 %268 }
 0x272   :  { %v271_v48 = vmul.f32 %v3349_v36, %v269_v47 }
 0x274   :  { %273 = vrot.lane.b32.xlu1 %v271_v48, %s3500_s3 }
 0x2e6   :  { %v274_v50 = vpop.permute.xlu1 %273 }
 0x2e7   :  { %3046 = vmatmul.mubr.msk.f32.vlgmr.msra.gmra.mxu1 %vm173_vm1, %v274_v50 }
 0x2e8   :  { %3049 = vmatpush3.msra.mxu1 %v3731_v49  ;;  %3056 = vmatprep.mubr.msk.f32.mxu1 %vm3498_vm0, %v3497_v2 }
 0x2e9   :  { %3050 = vmatprep.subr.mxu1 %v3497_v2 }
 0x2ea   :  { %3051 = vmatpush3.msra.mxu1 %v3737_v51 }
 0x2eb   :  { %3052 = vmatprep.subr.mxu1 %v3497_v2 }
 0x2ec   :  { %3053 = vmatpush3.msra.mxu1 %v3746_v52 }
 0x2ed   :  { %3054 = vmatprep.subr.mxu1 %v3497_v2 }
 0x2ee   :  { %3055 = vmatpush3.msra.mxu1 %v3753_v53 }
 0x2ef   :  { %3057 = vmatmul.mubr.f32.vlgmr.msra.gmra.mxu1 %v3497_v2  ;;  %3059 = vmatprep.subr.mxu1 %v3497_v2 }
 0x2f0   :  { %3060 = vmatpush3.msra.mxu1 %v3615_v7  ;;  %3067 = vmatprep.mubr.msk.f32.mxu1 %vm3498_vm0, %v3497_v2 }
 0x2f1   :  { %3061 = vmatprep.subr.mxu1 %v3497_v2 }
 0x2f2   :  { %3062 = vmatpush3.msra.mxu1 %v3620_v8 }
 0x2f3   :  { %3063 = vmatprep.subr.mxu1 %v3497_v2 }
 0x2f4   :  { %3064 = vmatpush3.msra.mxu1 %v3630_v10 }
 0x2f5   :  { %3065 = vmatprep.subr.mxu1 %v3497_v2 }
 0x2f6   :  { %3066 = vmatpush3.msra.mxu1 %v3640_v12 }
 0x2f7   :  { %3068 = vmatmul.mubr.msk.f32.vlgmr.msra.gmra.mxu1 %vm173_vm1, %v274_v50  ;;  %3070 = vmatprep.subr.mxu1 %v3497_v2 }
 0x2f8   :  { %3071 = vmatpush3.msra.mxu1 %v3701_v42  ;;  %3078 = vmatprep.mubr.msk.f32.mxu1 %vm3498_vm0, %v3497_v2 }
 0x2f9   :  { %3072 = vmatprep.subr.mxu1 %v3497_v2 }
 0x2fa   :  { %3073 = vmatpush3.msra.mxu1 %v3706_v43 }
 0x2fb   :  { %3074 = vmatprep.subr.mxu1 %v3497_v2 }
 0x2fc   :  { %3075 = vmatpush3.msra.mxu1 %v3713_v44 }
 0x2fd   :  { %3076 = vmatprep.subr.mxu1 %v3497_v2 }
 0x2fe   :  { %3077 = vmatpush3.msra.mxu1 %v3720_v45 }
 0x2ff   :  { %3081 = vmatprep.subr.mxu1 %v3497_v2 }
 0x3a7   :  { %v343_v54 = vpop.f32.mrf.mxu1 }
 0x3a9   :  { %v3047_v55 = vpop.f32.mrf.mxu1 }
 0x3af   :  { %v413_v57 = vpop.f32.mrf.mxu1 }
 0x3b0   :  { %v414_v58 = vadd.f32 %v413_v57, %v343_v54 }
 0x3b1   :  { %v3058_v59 = vpop.f32.mrf.mxu1 }
 0x3b2   :  { %v423_v60 = vadd.f32 %v3784_v56, %v414_v58 }
 0x3b4   :  { %3352 = vtanh.f32 %v423_v60  ;;  %v2785_v4 = vmul.f32 -1.442695, %v423_v60 }
 0x3b7   :  { %v521_v62 = vpop.f32.mrf.mxu1 }
 0x3b8   :  { %v525_v63 = vadd.f32 %v521_v62, %v454_v61 }
 0x3b9   :  { %v3069_v0 = vpop.f32.mrf.mxu1 }
 0x3ba   :  { %3354 = vtanh.f32 %v525_v63  ;;  %v2787_v5 = vmul.f32 -1.442695, %v525_v63 }
 0x3bb   :  { %3356 = vpow2.f32 %v2785_v4 }
 0x3bc   :  { %3358 = vpow2.f32 %v2787_v5 }
 0x3c1   :  { %v3353_v1 = vpop.eup %3352 }
 0x3c2   :  { %433 = vrot.lane.b32.xlu1 %v3353_v1, %s3499_s1 }
 0x3c7   :  { %v3355_v3 = vpop.eup %3354 }
 0x3c8   :  { %535 = vrot.lane.b32.xlu0 %v3355_v3, %s3499_s1  ;;  %v3357_v6 = vpop.eup %3356 }
 0x3c9   :  { %v427_v9 = vadd.f32 1.0, %v3357_v6  ;;  %v3359_v11 = vpop.eup %3358 }
 0x3ca   :  { %v529_v13 = vadd.f32 1.0, %v3359_v11 }
 0x3cb   :  { %3360 = vrcp.f32 %v427_v9 }
 0x3cc   :  { %3362 = vrcp.f32 %v529_v13 }
 0x3d8   :  { %v3361_v14 = vpop.eup %3360 }
 0x3d9   :  { %v3363_v17 = vpop.eup %3362  ;;  %v431_v20 = vmul.f32 0.0, %v3361_v14 }
 0x3da   :  { %v533_v23 = vmul.f32 %v3363_v17, %v3695_v41 }
 0x434   :  { %v434_v15 = vpop.permute.xlu1 %433 }
 0x435   :  { %v436_v16 = vmul.f32 %v3361_v14, %v434_v15 }
 0x437   :  { %438 = vrot.lane.b32.xlu1 %v436_v16, %s3500_s3 }
 0x43a   :  { %v536_v18 = vpop.permute.xlu0 %535 }
 0x43b   :  { %v538_v19 = vmul.f32 %v3363_v17, %v536_v18 }
 0x43d   :  { %540 = vrot.lane.b32.xlu0 %v538_v19, %s3500_s3 }
 0x4a9   :  { %v439_v21 = vpop.permute.xlu1 %438 }
 0x4aa   :  { %v3791_v22 = vadd.f32 %v439_v21, %v431_v20 }
 0x4ac   :  { %3364 = vtanh.f32 %v3791_v22 }
 0x4af   :  { %v541_v24 = vpop.permute.xlu0 %540 }
 0x4b0   :  { %v3795_v25 = vadd.f32 %v541_v24, %v533_v23  ;;  %v1000_v24 = vld [vmem:[#allocation2 + $0x6] sm:$0x3] }
 0x4b2   :  { %3366 = vtanh.f32 %v3795_v25 }
 0x4b9   :  { %v3365_v26 = vpop.eup %3364 }
 0x4ba   :  { %444 = vrot.lane.b32.xlu1 %v3365_v26, %s3499_s1 }
 0x4bf   :  { %v3367_v27 = vpop.eup %3366 }
 0x4c0   :  { %546 = vrot.lane.b32.xlu0 %v3367_v27, %s3499_s1 }
 0x52c   :  { %v445_v28 = vpop.permute.xlu1 %444 }
 0x52d   :  { %v447_v29 = vmul.f32 %v3361_v14, %v445_v28 }
 0x52f   :  { %449 = vrot.lane.b32.xlu1 %v447_v29, %s3500_s3 }
 0x532   :  { %v547_v30 = vpop.permute.xlu0 %546 }
 0x533   :  { %v549_v31 = vmul.f32 %v3363_v17, %v547_v30 }
 0x535   :  { %551 = vrot.lane.b32.xlu0 %v549_v31, %s3500_s3 }
 0x5a1   :  { %v450_v32 = vpop.permute.xlu1 %449 }
 0x5a2   :  { %453 = vst.msk [vmem:[#allocation3] sm:$0x3] %vm452_vm2, %v450_v32 }
 0x5a7   :  { %v552_v33 = vpop.permute.xlu0 %551 }
 0x5a8   :  { %3079 = vmatmul.mubr.msk.f32.vlgmr.msra.gmra.mxu1 %vm173_vm1, %v552_v33  ;;  %3101 = vmatmul.mubr.msk.f32.vlgmr.msra.gmra.mxu0 %vm173_vm1, %v552_v33 }
 0x5a9   :  { %3082 = vmatpush3.msra.mxu1 %v3731_v49  ;;  %3089 = vmatprep.mubr.msk.f32.mxu1 %vm3498_vm0, %v3497_v2 }
 0x5aa   :  { %3083 = vmatprep.subr.mxu1 %v3497_v2  ;;  %3115 = vmatpush3.msra.mxu0 %v3731_v49 }
 0x5ab   :  { %3084 = vmatpush3.msra.mxu1 %v3737_v51  ;;  %3116 = vmatprep.subr.mxu0 %v3497_v2 }
 0x5ac   :  { %3085 = vmatprep.subr.mxu1 %v3497_v2  ;;  %3117 = vmatpush3.msra.mxu0 %v3737_v51 }
 0x5ad   :  { %3086 = vmatpush3.msra.mxu1 %v3746_v52  ;;  %3118 = vmatprep.subr.mxu0 %v3497_v2 }
 0x5ae   :  { %3087 = vmatprep.subr.mxu1 %v3497_v2  ;;  %3119 = vmatpush3.msra.mxu0 %v3746_v52 }
 0x5af   :  { %3088 = vmatpush3.msra.mxu1 %v3753_v53  ;;  %3120 = vmatprep.subr.mxu0 %v3497_v2 }
 0x5b0   :  { %3090 = vmatmul.mubr.msk.f32.vlgmr.msra.gmra.mxu1 %vm173_vm1, %v450_v32  ;;  %3103 = vmatprep.subr.mxu1 %v3497_v2 }
 0x5b1   :  { %3104 = vmatpush3.msra.mxu1 %v3701_v42  ;;  %3111 = vmatprep.mubr.msk.f32.mxu1 %vm3498_vm0, %v3497_v2 }
 0x5b2   :  { %3105 = vmatprep.subr.mxu1 %v3497_v2  ;;  %3121 = vmatpush3.msra.mxu0 %v3753_v53 }
 0x5b3   :  { %3106 = vmatpush3.msra.mxu1 %v3706_v43  ;;  %3122 = vmatprep.mubr.msk.f32.mxu0 %vm3498_vm0, %v3497_v2 }
 0x5b4   :  { %3107 = vmatprep.subr.mxu1 %v3497_v2  ;;  %3136 = vmatprep.subr.mxu0 %v3497_v2 }
 0x5b5   :  { %3108 = vmatpush3.msra.mxu1 %v3713_v44 }
 0x5b6   :  { %3109 = vmatprep.subr.mxu1 %v3497_v2 }
 0x5b7   :  { %3110 = vmatpush3.msra.mxu1 %v3720_v45 }
 0x5b8   :  { %3125 = vmatprep.subr.mxu1 %v3497_v2 }
 0x668   :  { %v621_v34 = vpop.f32.mrf.mxu1  ;;  %v794_v36 = vpop.f32.mrf.mxu0 }
 0x669   :  { %v798_v37 = vadd.f32 %v794_v36, %v727_v35 }
 0x66a   :  { %v3080_v38 = vpop.f32.mrf.mxu1  ;;  %v3102_v39 = vpop.f32.mrf.mxu0 }
 0x66b   :  { %3368 = vtanh.f32 %v798_v37  ;;  %v2792_v54 = vmul.f32 -1.442695, %v798_v37 }
 0x670   :  { %v693_v40 = vpop.f32.mrf.mxu1 }
 0x671   :  { %v694_v41 = vadd.f32 %v693_v40, %v621_v34 }
 0x672   :  { %v3091_v46 = vpop.f32.mrf.mxu1 }
 0x673   :  { %v697_v47 = vadd.f32 %v3784_v56, %v694_v41 }
 0x675   :  { %3370 = vtanh.f32 %v697_v47  ;;  %v2790_v55 = vmul.f32 -1.442695, %v697_v47 }
 0x676   :  { %3372 = vpow2.f32 %v2792_v54 }
 0x677   :  { %3374 = vpow2.f32 %v2790_v55 }
 0x678   :  { %v3369_v48 = vpop.eup %3368 }
 0x679   :  { %808 = vrot.lane.b32.xlu0 %v3369_v48, %s3499_s1 }
 0x682   :  { %v3371_v50 = vpop.eup %3370 }
 0x683   :  { %707 = vrot.lane.b32.xlu1 %v3371_v50, %s3499_s1  ;;  %v3373_v57 = vpop.eup %3372 }
 0x684   :  { %v802_v58 = vadd.f32 1.0, %v3373_v57  ;;  %v3375_v59 = vpop.eup %3374 }
 0x685   :  { %v701_v60 = vadd.f32 1.0, %v3375_v59 }
 0x686   :  { %3376 = vrcp.f32 %v802_v58 }
 0x687   :  { %3378 = vrcp.f32 %v701_v60 }
 0x693   :  { %v3377_v61 = vpop.eup %3376 }
 0x694   :  { %v3379_v0 = vpop.eup %3378  ;;  %v806_v4 = vmul.f32 %v3377_v61, %v3795_v25 }
 0x695   :  { %v705_v9 = vmul.f32 %v3379_v0, %v3791_v22 }
 0x6eb   :  { %v809_v62 = vpop.permute.xlu0 %808 }
 0x6ec   :  { %v811_v63 = vmul.f32 %v3377_v61, %v809_v62 }
 0x6ee   :  { %813 = vrot.lane.b32.xlu0 %v811_v63, %s3500_s3 }
 0x6f5   :  { %v708_v1 = vpop.permute.xlu1 %707 }
 0x6f6   :  { %v710_v3 = vmul.f32 %v3379_v0, %v708_v1 }
 0x6f8   :  { %712 = vrot.lane.b32.xlu1 %v710_v3, %s3500_s3 }
 0x760   :  { %v814_v5 = vpop.permute.xlu0 %813 }
 0x761   :  { %v3842_v6 = vadd.f32 %v814_v5, %v806_v4 }
 0x763   :  { %3380 = vtanh.f32 %v3842_v6 }
 0x76a   :  { %v713_v11 = vpop.permute.xlu1 %712 }
 0x76b   :  { %v3846_v13 = vadd.f32 %v713_v11, %v705_v9 }
 0x76d   :  { %3382 = vtanh.f32 %v3846_v13 }
 0x770   :  { %v3381_v14 = vpop.eup %3380 }
 0x771   :  { %819 = vrot.lane.b32.xlu0 %v3381_v14, %s3499_s1 }
 0x77a   :  { %v3383_v15 = vpop.eup %3382 }
 0x77b   :  { %718 = vrot.lane.b32.xlu1 %v3383_v15, %s3499_s1 }
 0x7e3   :  { %v820_v16 = vpop.permute.xlu0 %819 }
 0x7e4   :  { %v822_v17 = vmul.f32 %v3377_v61, %v820_v16  ;;  %v1273_v16 = vld [vmem:[#allocation2 + $0x8] sm:$0x3] }
 0x7e6   :  { %824 = vrot.lane.b32.xlu0 %v822_v17, %s3500_s3 }
 0x7ed   :  { %v719_v18 = vpop.permute.xlu1 %718 }
 0x7ee   :  { %v721_v19 = vmul.f32 %v3379_v0, %v719_v18 }
 0x7f0   :  { %723 = vrot.lane.b32.xlu1 %v721_v19, %s3500_s3 }
 0x858   :  { %v825_v20 = vpop.permute.xlu0 %824 }
 0x859   :  { %3112 = vmatmul.mubr.msk.f32.vlgmr.msra.gmra.mxu1 %vm173_vm1, %v825_v20 }
 0x85a   :  { %3126 = vmatpush3.msra.mxu1 %v3615_v7  ;;  %3133 = vmatprep.mubr.msk.f32.mxu1 %vm3498_vm0, %v3497_v2 }
 0x85b   :  { %3127 = vmatprep.subr.mxu1 %v3497_v2 }
 0x85c   :  { %3128 = vmatpush3.msra.mxu1 %v3620_v8 }
 0x85d   :  { %3129 = vmatprep.subr.mxu1 %v3497_v2 }
 0x85e   :  { %3130 = vmatpush3.msra.mxu1 %v3630_v10 }
 0x85f   :  { %3131 = vmatprep.subr.mxu1 %v3497_v2 }
 0x860   :  { %3132 = vmatpush3.msra.mxu1 %v3640_v12 }
 0x861   :  { %3134 = vmatmul.mubr.msk.f32.vlgmr.msra.gmra.mxu1 %vm173_vm1, %v825_v20  ;;  %3147 = vmatprep.subr.mxu1 %v3497_v2 }
 0x862   :  { %v724_v21 = vpop.permute.xlu1 %723  ;;  %3148 = vmatpush3.msra.mxu1 %v3731_v49  ;;  %3155 = vmatprep.mubr.msk.f32.mxu1 %vm3498_vm0, %v3497_v2 }
 0x863   :  { %726 = vst.msk [vmem:[#allocation3 + $0x2] sm:$0x3] %vm452_vm2, %v724_v21  ;;  %3123 = vmatmul.mubr.msk.f32.vlgmr.msra.gmra.mxu0 %vm173_vm1, %v724_v21  ;;  %3149 = vmatprep.subr.mxu1 %v3497_v2 }
 0x864   :  { %3137 = vmatpush3.msra.mxu0 %v3701_v42  ;;  %3144 = vmatprep.mubr.msk.f32.mxu0 %vm3498_vm0, %v3497_v2 }
 0x865   :  { %3138 = vmatprep.subr.mxu0 %v3497_v2  ;;  %3150 = vmatpush3.msra.mxu1 %v3737_v51 }
 0x866   :  { %3139 = vmatpush3.msra.mxu0 %v3706_v43  ;;  %3151 = vmatprep.subr.mxu1 %v3497_v2 }
 0x867   :  { %3140 = vmatprep.subr.mxu0 %v3497_v2  ;;  %3152 = vmatpush3.msra.mxu1 %v3746_v52 }
 0x868   :  { %3141 = vmatpush3.msra.mxu0 %v3713_v44  ;;  %3153 = vmatprep.subr.mxu1 %v3497_v2 }
 0x869   :  { %3142 = vmatprep.subr.mxu0 %v3497_v2  ;;  %3154 = vmatpush3.msra.mxu1 %v3753_v53 }
 0x86a   :  { %3143 = vmatpush3.msra.mxu0 %v3720_v45  ;;  %3169 = vmatprep.subr.mxu1 %v3497_v2 }
 0x86b   :  { %3158 = vmatprep.subr.mxu0 %v3497_v2 }
 0x919   :  { %v894_v22 = vpop.f32.mrf.mxu1 }
 0x91b   :  { %v3113_v23 = vpop.f32.mrf.mxu1 }
 0x921   :  { %v1067_v25 = vpop.f32.mrf.mxu1 }
 0x922   :  { %v1071_v26 = vadd.f32 %v1067_v25, %v1000_v24 }
 0x923   :  { %v966_v27 = vpop.f32.mrf.mxu0  ;;  %v3135_v28 = vpop.f32.mrf.mxu1 }
 0x924   :  { %3384 = vtanh.f32 %v1071_v26  ;;  %v967_v29 = vadd.f32 %v966_v27, %v894_v22  ;;  %v2797_v34 = vmul.f32 -1.442695, %v1071_v26 }
 0x925   :  { %v3124_v30 = vpop.f32.mrf.mxu0 }
 0x926   :  { %v970_v31 = vadd.f32 %v3784_v56, %v967_v29 }
 0x928   :  { %3386 = vtanh.f32 %v970_v31  ;;  %v2795_v35 = vmul.f32 -1.442695, %v970_v31 }
 0x929   :  { %3388 = vpow2.f32 %v2797_v34 }
 0x92a   :  { %3390 = vpow2.f32 %v2795_v35 }
 0x931   :  { %v3385_v32 = vpop.eup %3384 }
 0x932   :  { %1081 = vrot.lane.b32.xlu0 %v3385_v32, %s3499_s1 }
 0x935   :  { %v3387_v33 = vpop.eup %3386 }
 0x936   :  { %980 = vrot.lane.b32.xlu1 %v3387_v33, %s3499_s1  ;;  %v3389_v36 = vpop.eup %3388 }
 0x937   :  { %v1075_v37 = vadd.f32 1.0, %v3389_v36  ;;  %v3391_v38 = vpop.eup %3390 }
 0x938   :  { %v974_v39 = vadd.f32 1.0, %v3391_v38 }
 0x939   :  { %3392 = vrcp.f32 %v1075_v37 }
 0x93a   :  { %3394 = vrcp.f32 %v974_v39 }
 0x946   :  { %v3393_v40 = vpop.eup %3392 }
 0x947   :  { %v3395_v47 = vpop.eup %3394  ;;  %v1079_v54 = vmul.f32 %v3393_v40, %v3842_v6 }
 0x948   :  { %v978_v58 = vmul.f32 %v3395_v47, %v3846_v13 }
 0x9a4   :  { %v1082_v41 = vpop.permute.xlu0 %1081 }
 0x9a5   :  { %v1084_v46 = vmul.f32 %v3393_v40, %v1082_v41 }
 0x9a7   :  { %1086 = vrot.lane.b32.xlu0 %v1084_v46, %s3500_s3 }
 0x9a8   :  { %v981_v48 = vpop.permute.xlu1 %980 }
 0x9a9   :  { %v983_v50 = vmul.f32 %v3395_v47, %v981_v48 }
 0x9ab   :  { %985 = vrot.lane.b32.xlu1 %v983_v50, %s3500_s3 }
 0xa19   :  { %v1087_v55 = vpop.permute.xlu0 %1086 }
 0xa1a   :  { %v3893_v57 = vadd.f32 %v1087_v55, %v1079_v54 }
 0xa1c   :  { %3396 = vtanh.f32 %v3893_v57 }
 0xa1d   :  { %v986_v59 = vpop.permute.xlu1 %985 }
 0xa1e   :  { %v3897_v60 = vadd.f32 %v986_v59, %v978_v58  ;;  %v1546_v59 = vld [vmem:[#allocation2 + $0xa] sm:$0x3] }
 0xa20   :  { %3398 = vtanh.f32 %v3897_v60 }
 0xa29   :  { %v3397_v61 = vpop.eup %3396 }
 0xa2a   :  { %1092 = vrot.lane.b32.xlu0 %v3397_v61, %s3499_s1 }
 0xa2d   :  { %v3399_v62 = vpop.eup %3398 }
 0xa2e   :  { %991 = vrot.lane.b32.xlu1 %v3399_v62, %s3499_s1 }
 0xa9c   :  { %v1093_v63 = vpop.permute.xlu0 %1092 }
 0xa9d   :  { %v1095_v0 = vmul.f32 %v3393_v40, %v1093_v63 }
 0xa9f   :  { %1097 = vrot.lane.b32.xlu0 %v1095_v0, %s3500_s3 }
 0xaa0   :  { %v992_v1 = vpop.permute.xlu1 %991 }
 0xaa1   :  { %v994_v3 = vmul.f32 %v3395_v47, %v992_v1 }
 0xaa3   :  { %996 = vrot.lane.b32.xlu1 %v994_v3, %s3500_s3 }
 0xb11   :  { %v1098_v4 = vpop.permute.xlu0 %1097 }
 0xb12   :  { %3145 = vmatmul.mubr.msk.f32.vlgmr.msra.gmra.mxu0 %vm173_vm1, %v1098_v4 }
 0xb13   :  { %3159 = vmatpush3.msra.mxu0 %v3615_v7  ;;  %3166 = vmatprep.mubr.msk.f32.mxu0 %vm3498_vm0, %v3497_v2 }
 0xb14   :  { %3160 = vmatprep.subr.mxu0 %v3497_v2 }
 0xb15   :  { %3161 = vmatpush3.msra.mxu0 %v3620_v8  ;;  %v997_v5 = vpop.permute.xlu1 %996 }
 0xb16   :  { %999 = vst.msk [vmem:[#allocation3 + $0x4] sm:$0x3] %vm452_vm2, %v997_v5  ;;  %3162 = vmatprep.subr.mxu0 %v3497_v2  ;;  %3156 = vmatmul.mubr.msk.f32.vlgmr.msra.gmra.mxu1 %vm173_vm1, %v997_v5 }
 0xb17   :  { %3163 = vmatpush3.msra.mxu0 %v3630_v10  ;;  %3170 = vmatpush3.msra.mxu1 %v3701_v42 }
 0xb18   :  { %3164 = vmatprep.subr.mxu0 %v3497_v2  ;;  %3171 = vmatprep.subr.mxu1 %v3497_v2 }
 0xb19   :  { %3165 = vmatpush3.msra.mxu0 %v3640_v12  ;;  %3172 = vmatpush3.msra.mxu1 %v3706_v43 }
 0xb1a   :  { %3167 = vmatmul.mubr.msk.f32.vlgmr.msra.gmra.mxu0 %vm173_vm1, %v1098_v4  ;;  %3180 = vmatprep.subr.mxu0 %v3497_v2 }
 0xb1b   :  { %3181 = vmatpush3.msra.mxu0 %v3731_v49  ;;  %3173 = vmatprep.subr.mxu1 %v3497_v2 }
 0xb1c   :  { %3182 = vmatprep.subr.mxu0 %v3497_v2  ;;  %3174 = vmatpush3.msra.mxu1 %v3713_v44 }
 0xb1d   :  { %3183 = vmatpush3.msra.mxu0 %v3737_v51  ;;  %3175 = vmatprep.subr.mxu1 %v3497_v2 }
 0xb1e   :  { %3184 = vmatprep.subr.mxu0 %v3497_v2  ;;  %3176 = vmatpush3.msra.mxu1 %v3720_v45 }
 0xb1f   :  { %3185 = vmatpush3.msra.mxu0 %v3746_v52  ;;  %3188 = vmatprep.mubr.msk.f32.mxu0 %vm3498_vm0, %v3497_v2 }
 0xb20   :  { %3186 = vmatprep.subr.mxu0 %v3497_v2  ;;  %3177 = vmatprep.mubr.msk.f32.mxu1 %vm3498_vm0, %v3497_v2 }
 0xb21   :  { %3187 = vmatpush3.msra.mxu0 %v3753_v53  ;;  %3191 = vmatprep.subr.mxu1 %v3497_v2 }
 0xb22   :  { %3202 = vmatprep.subr.mxu0 %v3497_v2 }
 0xbd2   :  { %v1167_v6 = vpop.f32.mrf.mxu0 }
 0xbd4   :  { %v3146_v9 = vpop.f32.mrf.mxu0 }
 0xbd6   :  { %v1239_v11 = vpop.f32.mrf.mxu1 }
 0xbd7   :  { %v1240_v13 = vadd.f32 %v1239_v11, %v1167_v6 }
 0xbd8   :  { %v3157_v14 = vpop.f32.mrf.mxu1 }
 0xbd9   :  { %v1243_v15 = vadd.f32 %v3784_v56, %v1240_v13 }
 0xbda   :  { %v1340_v17 = vpop.f32.mrf.mxu0 }
 0xbdb   :  { %3400 = vtanh.f32 %v1243_v15  ;;  %v1344_v18 = vadd.f32 %v1340_v17, %v1273_v16  ;;  %v2800_v22 = vmul.f32 -1.442695, %v1243_v15 }
 0xbdc   :  { %v3168_v19 = vpop.f32.mrf.mxu0 }
 0xbdd   :  { %3402 = vtanh.f32 %v1344_v18  ;;  %v2802_v23 = vmul.f32 -1.442695, %v1344_v18 }
 0xbde   :  { %3404 = vpow2.f32 %v2800_v22 }
 0xbdf   :  { %3406 = vpow2.f32 %v2802_v23 }
 0xbe8   :  { %v3401_v20 = vpop.eup %3400 }
 0xbe9   :  { %1253 = vrot.lane.b32.xlu1 %v3401_v20, %s3499_s1 }
 0xbea   :  { %v3403_v21 = vpop.eup %3402 }
 0xbeb   :  { %1354 = vrot.lane.b32.xlu0 %v3403_v21, %s3499_s1  ;;  %v3405_v24 = vpop.eup %3404 }
 0xbec   :  { %v3407_v25 = vpop.eup %3406  ;;  %v1247_v26 = vadd.f32 1.0, %v3405_v24 }
 0xbed   :  { %v1348_v27 = vadd.f32 1.0, %v3407_v25 }
 0xbee   :  { %3408 = vrcp.f32 %v1247_v26 }
 0xbef   :  { %3410 = vrcp.f32 %v1348_v27 }
 0xbfb   :  { %v3409_v28 = vpop.eup %3408 }
 0xbfc   :  { %v3411_v31 = vpop.eup %3410  ;;  %v1251_v34 = vmul.f32 %v3409_v28, %v3897_v60 }
 0xbfd   :  { %v1352_v37 = vmul.f32 %v3411_v31, %v3893_v57 }
 0xc5b   :  { %v1254_v29 = vpop.permute.xlu1 %1253 }
 0xc5c   :  { %v1256_v30 = vmul.f32 %v3409_v28, %v1254_v29 }
 0xc5d   :  { %v1355_v32 = vpop.permute.xlu0 %1354 }
 0xc5e   :  { %1258 = vrot.lane.b32.xlu1 %v1256_v30, %s3500_s3  ;;  %v1357_v33 = vmul.f32 %v3411_v31, %v1355_v32 }
 0xc60   :  { %1359 = vrot.lane.b32.xlu0 %v1357_v33, %s3500_s3 }
 0xcd0   :  { %v1259_v35 = vpop.permute.xlu1 %1258 }
 0xcd1   :  { %v3944_v36 = vadd.f32 %v1259_v35, %v1251_v34 }
 0xcd2   :  { %v1360_v38 = vpop.permute.xlu0 %1359 }
 0xcd3   :  { %3412 = vtanh.f32 %v3944_v36  ;;  %v3948_v39 = vadd.f32 %v1360_v38, %v1352_v37  ;;  %v1819_v37 = vld [vmem:[#allocation2 + $0xc] sm:$0x3] }
 0xcd5   :  { %3414 = vtanh.f32 %v3948_v39 }
 0xce0   :  { %v3413_v40 = vpop.eup %3412 }
 0xce1   :  { %1264 = vrot.lane.b32.xlu1 %v3413_v40, %s3499_s1 }
 0xce2   :  { %v3415_v41 = vpop.eup %3414 }
 0xce3   :  { %1365 = vrot.lane.b32.xlu0 %v3415_v41, %s3499_s1 }
 0xd53   :  { %v1265_v46 = vpop.permute.xlu1 %1264 }
 0xd54   :  { %v1267_v47 = vmul.f32 %v3409_v28, %v1265_v46 }
 0xd55   :  { %v1366_v48 = vpop.permute.xlu0 %1365 }
 0xd56   :  { %1269 = vrot.lane.b32.xlu1 %v1267_v47, %s3500_s3  ;;  %v1368_v50 = vmul.f32 %v3411_v31, %v1366_v48 }
 0xd58   :  { %1370 = vrot.lane.b32.xlu0 %v1368_v50, %s3500_s3 }
 0xdc8   :  { %v1270_v54 = vpop.permute.xlu1 %1269 }
 0xdc9   :  { %1272 = vst.msk [vmem:[#allocation3 + $0x6] sm:$0x3] %vm452_vm2, %v1270_v54  ;;  %3189 = vmatmul.mubr.msk.f32.vlgmr.msra.gmra.mxu0 %vm173_vm1, %v1270_v54 }
 0xdca   :  { %3203 = vmatpush3.msra.mxu0 %v3701_v42  ;;  %3210 = vmatprep.mubr.msk.f32.mxu0 %vm3498_vm0, %v3497_v2  ;;  %v1371_v55 = vpop.permute.xlu0 %1370 }
 0xdcb   :  { %3204 = vmatprep.subr.mxu0 %v3497_v2  ;;  %3178 = vmatmul.mubr.msk.f32.vlgmr.msra.gmra.mxu1 %vm173_vm1, %v1371_v55 }
 0xdcc   :  { %3205 = vmatpush3.msra.mxu0 %v3706_v43  ;;  %3192 = vmatpush3.msra.mxu1 %v3615_v7 }
 0xdcd   :  { %3199 = vmatprep.mubr.msk.f32.mxu1 %vm3498_vm0, %v3497_v2  ;;  %3193 = vmatprep.subr.mxu1 %v3497_v2 }
 0xdce   :  { %3206 = vmatprep.subr.mxu0 %v3497_v2  ;;  %3194 = vmatpush3.msra.mxu1 %v3620_v8 }
 0xdcf   :  { %3207 = vmatpush3.msra.mxu0 %v3713_v44  ;;  %3195 = vmatprep.subr.mxu1 %v3497_v2 }
 0xdd0   :  { %3208 = vmatprep.subr.mxu0 %v3497_v2  ;;  %3196 = vmatpush3.msra.mxu1 %v3630_v10 }
 0xdd1   :  { %3209 = vmatpush3.msra.mxu0 %v3720_v45  ;;  %3197 = vmatprep.subr.mxu1 %v3497_v2 }
 0xdd2   :  { %3224 = vmatprep.subr.mxu0 %v3497_v2  ;;  %3198 = vmatpush3.msra.mxu1 %v3640_v12 }
 0xdd3   :  { %3200 = vmatmul.mubr.msk.f32.vlgmr.msra.gmra.mxu1 %vm173_vm1, %v1371_v55  ;;  %3213 = vmatprep.subr.mxu1 %v3497_v2 }
 0xdd4   :  { %3214 = vmatpush3.msra.mxu1 %v3731_v49  ;;  %3221 = vmatprep.mubr.msk.f32.mxu1 %vm3498_vm0, %v3497_v2 }
 0xdd5   :  { %3215 = vmatprep.subr.mxu1 %v3497_v2 }
 0xdd6   :  { %3216 = vmatpush3.msra.mxu1 %v3737_v51 }
 0xdd7   :  { %3217 = vmatprep.subr.mxu1 %v3497_v2 }
 0xdd8   :  { %3218 = vmatpush3.msra.mxu1 %v3746_v52 }
 0xdd9   :  { %3219 = vmatprep.subr.mxu1 %v3497_v2 }
 0xdda   :  { %3220 = vmatpush3.msra.mxu1 %v3753_v53 }
 0xddb   :  { %3235 = vmatprep.subr.mxu1 %v3497_v2 }
 0xe89   :  { %v1512_v7 = vpop.f32.mrf.mxu0 }
 0xe8b   :  { %v3190_v8 = vpop.f32.mrf.mxu0  ;;  %v1440_v10 = vpop.f32.mrf.mxu1 }
 0xe8c   :  { %v1513_v12 = vadd.f32 %v1512_v7, %v1440_v10 }
 0xe8d   :  { %v3179_v57 = vpop.f32.mrf.mxu1 }
 0xe8e   :  { %v1516_v58 = vadd.f32 %v3784_v56, %v1513_v12 }
 0xe90   :  { %3416 = vtanh.f32 %v1516_v58  ;;  %v2805_v1 = vmul.f32 -1.442695, %v1516_v58 }
 0xe93   :  { %v1613_v60 = vpop.f32.mrf.mxu1 }
 0xe94   :  { %v1617_v61 = vadd.f32 %v1613_v60, %v1546_v59 }
 0xe95   :  { %v3201_v62 = vpop.f32.mrf.mxu1 }
 0xe96   :  { %3418 = vtanh.f32 %v1617_v61  ;;  %v2807_v3 = vmul.f32 -1.442695, %v1617_v61 }
 0xe97   :  { %3420 = vpow2.f32 %v2805_v1 }
 0xe98   :  { %3422 = vpow2.f32 %v2807_v3 }
 0xe9d   :  { %v3417_v63 = vpop.eup %3416 }
 0xe9e   :  { %1526 = vrot.lane.b32.xlu1 %v3417_v63, %s3499_s1 }
 0xea3   :  { %v3419_v0 = vpop.eup %3418 }
 0xea4   :  { %1627 = vrot.lane.b32.xlu0 %v3419_v0, %s3499_s1  ;;  %v3421_v4 = vpop.eup %3420 }
 0xea5   :  { %v1520_v5 = vadd.f32 1.0, %v3421_v4  ;;  %v3423_v6 = vpop.eup %3422 }
 0xea6   :  { %v1621_v9 = vadd.f32 1.0, %v3423_v6  ;;  %v3488_v6 = vld [vmem:[%s4265_s4 + $0x18] sm:$0xff] }
 0xea7   :  { %3424 = vrcp.f32 %v1520_v5 }
 0xea8   :  { %3426 = vrcp.f32 %v1621_v9  ;;  %v3489_v9 = vld [vmem:[%s4265_s4 + $0x10] sm:$0xff] }
 0xeb4   :  { %v3425_v11 = vpop.eup %3424 }
 0xeb5   :  { %v3427_v15 = vpop.eup %3426  ;;  %v1524_v18 = vmul.f32 %v3425_v11, %v3944_v36 }
 0xeb6   :  { %v1625_v21 = vmul.f32 %v3427_v15, %v3948_v39 }
 0xf10   :  { %v1527_v13 = vpop.permute.xlu1 %1526 }
 0xf11   :  { %v1529_v14 = vmul.f32 %v3425_v11, %v1527_v13  ;;  %v3490_v13 = vld [vmem:[%s4265_s4 + $0x8] sm:$0xff] }
 0xf13   :  { %1531 = vrot.lane.b32.xlu1 %v1529_v14, %s3500_s3  ;;  %v3491_v14 = vld [vmem:[%s4265_s4] sm:$0xff] }
 0xf16   :  { %v1628_v16 = vpop.permute.xlu0 %1627 }
 0xf17   :  { %v1630_v17 = vmul.f32 %v3427_v15, %v1628_v16  ;;  %v3493_v16 = vld [vmem:[%s4266_s5 + $0x10] sm:$0xff] }
 0xf19   :  { %1632 = vrot.lane.b32.xlu0 %v1630_v17, %s3500_s3  ;;  %v3494_v17 = vld [vmem:[%s4266_s5 + $0x8] sm:$0xff] }
 0xf85   :  { %v1532_v19 = vpop.permute.xlu1 %1531 }
 0xf86   :  { %v3995_v20 = vadd.f32 %v1532_v19, %v1524_v18  ;;  %v3495_v18 = vld [vmem:[%s4266_s5] sm:$0xff] }
 0xf88   :  { %3428 = vtanh.f32 %v3995_v20 }
 0xf8b   :  { %v1633_v22 = vpop.permute.xlu0 %1632 }
 0xf8c   :  { %v3999_v23 = vadd.f32 %v1633_v22, %v1625_v21 }
 0xf8e   :  { %3430 = vtanh.f32 %v3999_v23 }
 0xf95   :  { %v3429_v24 = vpop.eup %3428 }
 0xf96   :  { %1537 = vrot.lane.b32.xlu1 %v3429_v24, %s3499_s1  ;;  %v3496_v24 = vld [vmem:[%s4267_s6] ss:$0 sm:$0xff] }
 0xf9b   :  { %v3431_v25 = vpop.eup %3430 }
 0xf9c   :  { %1638 = vrot.lane.b32.xlu0 %v3431_v25, %s3499_s1 }
0x1008   :  { %v1538_v26 = vpop.permute.xlu1 %1537 }
0x1009   :  { %v1540_v27 = vmul.f32 %v3425_v11, %v1538_v26  ;;  %v2092_v26 = vld [vmem:[#allocation2 + $0xe] sm:$0x3] }
0x100b   :  { %1542 = vrot.lane.b32.xlu1 %v1540_v27, %s3500_s3 }
0x100e   :  { %v1639_v28 = vpop.permute.xlu0 %1638 }
0x100f   :  { %v1641_v29 = vmul.f32 %v3427_v15, %v1639_v28  ;;  %v3492_v15 = vld [vmem:[%s4266_s5 + $0x18] sm:$0xff] }
0x1011   :  { %1643 = vrot.lane.b32.xlu0 %v1641_v29, %s3500_s3 }
0x107d   :  { %v1543_v30 = vpop.permute.xlu1 %1542 }
0x107e   :  { %1545 = vst.msk [vmem:[#allocation3 + $0x8] sm:$0x3] %vm452_vm2, %v1543_v30  ;;  %3222 = vmatmul.mubr.msk.f32.vlgmr.msra.gmra.mxu1 %vm173_vm1, %v1543_v30 }
0x107f   :  { %3236 = vmatpush3.msra.mxu1 %v3701_v42  ;;  %3243 = vmatprep.mubr.msk.f32.mxu1 %vm3498_vm0, %v3497_v2  ;;  %v4020_v42 = vld [vmem:[%s4263_s2 + $0x18] sm:$0xff] }
0x1080   :  { %3237 = vmatprep.subr.mxu1 %v3497_v2 }
0x1081   :  { %3238 = vmatpush3.msra.mxu1 %v3706_v43  ;;  %v4030_v43 = vld [vmem:[%s4263_s2 + $0x10] sm:$0xff] }
0x1082   :  { %3239 = vmatprep.subr.mxu1 %v3497_v2 }
0x1083   :  { %v1644_v31 = vpop.permute.xlu0 %1643  ;;  %3240 = vmatpush3.msra.mxu1 %v3713_v44  ;;  %v4038_v44 = vld [vmem:[%s4263_s2 + $0x8] sm:$0xff] }
0x1084   :  { %3211 = vmatmul.mubr.msk.f32.vlgmr.msra.gmra.mxu0 %vm173_vm1, %v1644_v31  ;;  %3241 = vmatprep.subr.mxu1 %v3497_v2 }
0x1085   :  { %3225 = vmatpush3.msra.mxu0 %v4020_v42  ;;  %3232 = vmatprep.mubr.msk.f32.mxu0 %vm3498_vm0, %v3497_v2 }
0x1086   :  { %3226 = vmatprep.subr.mxu0 %v3497_v2  ;;  %3242 = vmatpush3.msra.mxu1 %v3720_v45  ;;  %v4045_v45 = vld [vmem:[%s4263_s2] sm:$0xff] }
0x1087   :  { %3227 = vmatpush3.msra.mxu0 %v4030_v43  ;;  %3257 = vmatprep.subr.mxu1 %v3497_v2 }
0x1088   :  { %3228 = vmatprep.subr.mxu0 %v3497_v2 }
0x1089   :  { %3229 = vmatpush3.msra.mxu0 %v4038_v44 }
0x108a   :  { %3230 = vmatprep.subr.mxu0 %v3497_v2 }
0x108b   :  { %3231 = vmatpush3.msra.mxu0 %v4045_v45 }
0x108c   :  { %3233 = vmatmul.mubr.msk.f32.vlgmr.msra.gmra.mxu0 %vm173_vm1, %v1644_v31  ;;  %3246 = vmatprep.subr.mxu0 %v3497_v2 }
0x108d   :  { %3247 = vmatpush3.msra.mxu0 %v3731_v49  ;;  %3254 = vmatprep.mubr.msk.f32.mxu0 %vm3498_vm0, %v3497_v2 }
0x108e   :  { %3248 = vmatprep.subr.mxu0 %v3497_v2 }
0x108f   :  { %3249 = vmatpush3.msra.mxu0 %v3737_v51 }
0x1090   :  { %3250 = vmatprep.subr.mxu0 %v3497_v2 }
0x1091   :  { %3251 = vmatpush3.msra.mxu0 %v3746_v52 }
0x1092   :  { %3252 = vmatprep.subr.mxu0 %v3497_v2 }
0x1093   :  { %3253 = vmatpush3.msra.mxu0 %v3753_v53 }
0x1094   :  { %3268 = vmatprep.subr.mxu0 %v3497_v2 }
0x113e   :  { %v1785_v32 = vpop.f32.mrf.mxu1 }
0x1140   :  { %v3223_v33 = vpop.f32.mrf.mxu1 }
0x1144   :  { %v1713_v49 = vpop.f32.mrf.mxu0 }
0x1145   :  { %v1786_v34 = vadd.f32 %v1785_v32, %v1713_v49 }
0x1146   :  { %v3212_v35 = vpop.f32.mrf.mxu0 }
0x1147   :  { %v1789_v36 = vadd.f32 %v3784_v56, %v1786_v34 }
0x1149   :  { %3432 = vtanh.f32 %v1789_v36  ;;  %v2810_v53 = vmul.f32 -1.442695, %v1789_v36 }
0x114c   :  { %v1886_v51 = vpop.f32.mrf.mxu0 }
0x114d   :  { %v1890_v38 = vadd.f32 %v1886_v51, %v1819_v37 }
0x114e   :  { %v3234_v39 = vpop.f32.mrf.mxu0 }
0x114f   :  { %3434 = vtanh.f32 %v1890_v38  ;;  %v2812_v41 = vmul.f32 -1.442695, %v1890_v38 }
0x1150   :  { %3436 = vpow2.f32 %v2810_v53 }
0x1151   :  { %3438 = vpow2.f32 %v2812_v41 }
0x1156   :  { %v3433_v52 = vpop.eup %3432 }
0x1157   :  { %1799 = vrot.lane.b32.xlu1 %v3433_v52, %s3499_s1 }
0x115c   :  { %v3435_v40 = vpop.eup %3434 }
0x115d   :  { %1900 = vrot.lane.b32.xlu0 %v3435_v40, %s3499_s1  ;;  %v3437_v46 = vpop.eup %3436 }
0x115e   :  { %v1793_v47 = vadd.f32 1.0, %v3437_v46  ;;  %v3439_v48 = vpop.eup %3438 }
0x115f   :  { %v1894_v56 = vadd.f32 1.0, %v3439_v48 }
0x1160   :  { %3440 = vrcp.f32 %v1793_v47 }
0x1161   :  { %3442 = vrcp.f32 %v1894_v56 }
0x116d   :  { %v3441_v50 = vpop.eup %3440 }
0x116e   :  { %v3443_v7 = vpop.eup %3442  ;;  %v1797_v12 = vmul.f32 %v3441_v50, %v3995_v20 }
0x116f   :  { %v1898_v59 = vmul.f32 %v3443_v7, %v3999_v23 }
0x11c9   :  { %v1800_v54 = vpop.permute.xlu1 %1799 }
0x11ca   :  { %v1802_v55 = vmul.f32 %v3441_v50, %v1800_v54 }
0x11cc   :  { %1804 = vrot.lane.b32.xlu1 %v1802_v55, %s3500_s3 }
0x11cf   :  { %v1901_v8 = vpop.permute.xlu0 %1900 }
0x11d0   :  { %v1903_v10 = vmul.f32 %v3443_v7, %v1901_v8  ;;  %v4144_v8 = vld [vmem:[#allocation3] sm:$0xff] }
0x11d2   :  { %1905 = vrot.lane.b32.xlu0 %v1903_v10, %s3500_s3 }
0x123e   :  { %v1805_v57 = vpop.permute.xlu1 %1804 }
0x123f   :  { %v4066_v58 = vadd.f32 %v1805_v57, %v1797_v12 }
0x1241   :  { %3444 = vtanh.f32 %v4066_v58 }
0x1244   :  { %v1906_v60 = vpop.permute.xlu0 %1905 }
0x1245   :  { %v4070_v61 = vadd.f32 %v1906_v60, %v1898_v59 }
0x1247   :  { %3446 = vtanh.f32 %v4070_v61 }
0x124e   :  { %v3445_v62 = vpop.eup %3444 }
0x124f   :  { %1810 = vrot.lane.b32.xlu1 %v3445_v62, %s3499_s1 }
0x1254   :  { %v3447_v63 = vpop.eup %3446 }
0x1255   :  { %1911 = vrot.lane.b32.xlu0 %v3447_v63, %s3499_s1 }
0x12c1   :  { %v1811_v0 = vpop.permute.xlu1 %1810 }
0x12c2   :  { %v1813_v1 = vmul.f32 %v3441_v50, %v1811_v0 }
0x12c4   :  { %1815 = vrot.lane.b32.xlu1 %v1813_v1, %s3500_s3 }
0x12c7   :  { %v1912_v3 = vpop.permute.xlu0 %1911 }
0x12c8   :  { %v1914_v4 = vmul.f32 %v3443_v7, %v1912_v3 }
0x12ca   :  { %1916 = vrot.lane.b32.xlu0 %v1914_v4, %s3500_s3 }
0x1336   :  { %v1816_v5 = vpop.permute.xlu1 %1815 }
0x1337   :  { %1818 = vst.msk [vmem:[#allocation3 + $0xa] sm:$0x3] %vm452_vm2, %v1816_v5  ;;  %3255 = vmatmul.mubr.msk.f32.vlgmr.msra.gmra.mxu0 %vm173_vm1, %v1816_v5 }
0x1338   :  { %3269 = vmatpush3.msra.mxu0 %v3488_v6  ;;  %3276 = vmatprep.mubr.msk.f32.mxu0 %vm3498_vm0, %v3497_v2 }
0x1339   :  { %3270 = vmatprep.subr.mxu0 %v3497_v2 }
0x133a   :  { %3271 = vmatpush3.msra.mxu0 %v3489_v9 }
0x133b   :  { %3272 = vmatprep.subr.mxu0 %v3497_v2 }
0x133c   :  { %v1917_v11 = vpop.permute.xlu0 %1916  ;;  %3273 = vmatpush3.msra.mxu0 %v3490_v13  ;;  %v2370_v13 = vld [vmem:[%s4268_s7 + $0x18] sm:$0xff] }
0x133d   :  { %3244 = vmatmul.mubr.msk.f32.vlgmr.msra.gmra.mxu1 %vm173_vm1, %v1917_v11  ;;  %3274 = vmatprep.subr.mxu0 %v3497_v2 }
0x133e   :  { %3258 = vmatpush3.msra.mxu1 %v4020_v42  ;;  %3265 = vmatprep.mubr.msk.f32.mxu1 %vm3498_vm0, %v3497_v2 }
0x133f   :  { %3259 = vmatprep.subr.mxu1 %v3497_v2  ;;  %3275 = vmatpush3.msra.mxu0 %v3491_v14  ;;  %v2369_v14 = vld [vmem:[%s4268_s7 + $0x10] sm:$0xff] }
0x1340   :  { %3260 = vmatpush3.msra.mxu1 %v4030_v43  ;;  %3290 = vmatprep.subr.mxu0 %v2370_v13 }
0x1341   :  { %3261 = vmatprep.subr.mxu1 %v3497_v2 }
0x1342   :  { %3262 = vmatpush3.msra.mxu1 %v4038_v44 }
0x1343   :  { %3263 = vmatprep.subr.mxu1 %v3497_v2 }
0x1344   :  { %3264 = vmatpush3.msra.mxu1 %v4045_v45 }
0x1345   :  { %3266 = vmatmul.mubr.msk.f32.vlgmr.msra.gmra.mxu1 %vm173_vm1, %v1917_v11  ;;  %3279 = vmatprep.subr.mxu1 %v3497_v2 }
0x1346   :  { %3280 = vmatpush3.msra.mxu1 %v3492_v15  ;;  %3287 = vmatprep.mubr.msk.f32.mxu1 %vm3498_vm0, %v3497_v2  ;;  %v2368_v15 = vld [vmem:[%s4268_s7 + $0x8] sm:$0xff] }
0x1347   :  { %3281 = vmatprep.subr.mxu1 %v3497_v2 }
0x1348   :  { %3282 = vmatpush3.msra.mxu1 %v3493_v16  ;;  %v2367_v16 = vld [vmem:[%s4268_s7] sm:$0xff] }
0x1349   :  { %3283 = vmatprep.subr.mxu1 %v3497_v2 }
0x134a   :  { %3284 = vmatpush3.msra.mxu1 %v3494_v17 }
0x134b   :  { %3285 = vmatprep.subr.mxu1 %v3497_v2 }
0x134c   :  { %3286 = vmatpush3.msra.mxu1 %v3495_v18 }
0x134d   :  { %3301 = vmatprep.subr.mxu1 %v3497_v2 }
0x13f7   :  { %v2058_v19 = vpop.f32.mrf.mxu0 }
0x13f9   :  { %v3256_v20 = vpop.f32.mrf.mxu0 }
0x13fd   :  { %v1986_v21 = vpop.f32.mrf.mxu1 }
0x13fe   :  { %v2059_v22 = vadd.f32 %v2058_v19, %v1986_v21  ;;  %v2821_v21 = vld [vmem:[%s4269_s8] ss:$0 sm:$0xff] }
0x13ff   :  { %v3245_v23 = vpop.f32.mrf.mxu1 }
0x1400   :  { %v2062_v25 = vadd.f32 %v3496_v24, %v2059_v22 }
0x1402   :  { %3448 = vtanh.f32 %v2062_v25  ;;  %v2815_v42 = vmul.f32 -1.442695, %v2062_v25 }
0x1405   :  { %v2159_v27 = vpop.f32.mrf.mxu1 }
0x1406   :  { %v2163_v28 = vadd.f32 %v2159_v27, %v2092_v26  ;;  %v2824_v26 = vld [vmem:[%s4270_s9] ss:$0 sm:$0xff] }
0x1407   :  { %v3267_v29 = vpop.f32.mrf.mxu1 }
0x1408   :  { %3450 = vtanh.f32 %v2163_v28  ;;  %v2817_v43 = vmul.f32 -1.442695, %v2163_v28 }
0x1409   :  { %3452 = vpow2.f32 %v2815_v42 }
0x140a   :  { %3454 = vpow2.f32 %v2817_v43 }
0x140f   :  { %v3449_v30 = vpop.eup %3448 }
0x1410   :  { %2072 = vrot.lane.b32.xlu0 %v3449_v30, %s3499_s1 }
0x1415   :  { %v3451_v31 = vpop.eup %3450 }
0x1416   :  { %2173 = vrot.lane.b32.xlu1 %v3451_v31, %s3499_s1  ;;  %v3453_v44 = vpop.eup %3452 }
0x1417   :  { %v2066_v45 = vadd.f32 1.0, %v3453_v44  ;;  %v3455_v32 = vpop.eup %3454 }
0x1418   :  { %v2167_v33 = vadd.f32 1.0, %v3455_v32 }
0x1419   :  { %3456 = vrcp.f32 %v2066_v45 }
0x141a   :  { %3458 = vrcp.f32 %v2167_v33 }
0x1426   :  { %v3457_v49 = vpop.eup %3456 }
0x1427   :  { %v3459_v36 = vpop.eup %3458  ;;  %v2070_v38 = vmul.f32 %v3457_v49, %v4066_v58 }
0x1428   :  { %v2171_v40 = vmul.f32 %v3459_v36, %v4070_v61 }
0x1482   :  { %v2073_v34 = vpop.permute.xlu0 %2072 }
0x1483   :  { %v2075_v35 = vmul.f32 %v3457_v49, %v2073_v34 }
0x1485   :  { %2077 = vrot.lane.b32.xlu0 %v2075_v35, %s3500_s3 }
0x1488   :  { %v2174_v37 = vpop.permute.xlu1 %2173 }
0x1489   :  { %v2176_v51 = vmul.f32 %v3459_v36, %v2174_v37 }
0x148b   :  { %2178 = vrot.lane.b32.xlu1 %v2176_v51, %s3500_s3 }
0x14f7   :  { %v2078_v39 = vpop.permute.xlu0 %2077 }
0x14f8   :  { %v2080_v52 = vadd.f32 %v2078_v39, %v2070_v38 }
0x14fa   :  { %3460 = vtanh.f32 %v2080_v52 }
0x14fd   :  { %v2179_v53 = vpop.permute.xlu1 %2178 }
0x14fe   :  { %v2181_v41 = vadd.f32 %v2179_v53, %v2171_v40  ;;  %v2491_v40 = vld [vmem:[%s4271_s10] sm:$0xff]  ;;  %v2492_v53 = vld [vmem:[%s4271_s10 + $0x8] sm:$0xff] }
0x1500   :  { %3462 = vtanh.f32 %v2181_v41 }
0x1507   :  { %v3461_v46 = vpop.eup %3460 }
0x1508   :  { %2083 = vrot.lane.b32.xlu0 %v3461_v46, %s3499_s1 }
0x150d   :  { %v3463_v47 = vpop.eup %3462 }
0x150e   :  { %2184 = vrot.lane.b32.xlu1 %v3463_v47, %s3499_s1 }
0x157a   :  { %v2084_v48 = vpop.permute.xlu0 %2083 }
0x157b   :  { %v2086_v56 = vmul.f32 %v3457_v49, %v2084_v48 }
0x157d   :  { %2088 = vrot.lane.b32.xlu0 %v2086_v56, %s3500_s3 }
0x1580   :  { %v2185_v50 = vpop.permute.xlu1 %2184 }
0x1581   :  { %v2187_v54 = vmul.f32 %v3459_v36, %v2185_v50 }
0x1583   :  { %2189 = vrot.lane.b32.xlu1 %v2187_v54, %s3500_s3 }
0x15ef   :  { %v2089_v55 = vpop.permute.xlu0 %2088 }
0x15f0   :  { %2091 = vst.msk [vmem:[#allocation3 + $0xc] sm:$0x3] %vm452_vm2, %v2089_v55  ;;  %3288 = vmatmul.mubr.msk.f32.vlgmr.msra.gmra.mxu1 %vm173_vm1, %v2089_v55 }
0x15f1   :  { %3305 = vmatprep.mubr.msk.f32.mxu1 %vm3498_vm0, %v3497_v2 }
0x15f5   :  { %v2190_v7 = vpop.permute.xlu1 %2189 }
0x15f6   :  { %3277 = vmatmul.mubr.msk.f32.vlgmr.msra.gmra.mxu0 %vm173_vm1, %v2190_v7 }
0x15f7   :  { %3298 = vmatprep.mubr.msk.f32.mxu0 %vm173_vm1, %v4144_v8  ;;  %3291 = vmatpush3.msra.mxu0 %v2370_v13  ;;  %v2600_v13 = vld [vmem:[%s4274_s12 + $0x18] sm:$0xff] }
0x15f8   :  { %3292 = vmatprep.subr.mxu0 %v2369_v14 }
0x15f9   :  { %3293 = vmatpush3.msra.mxu0 %v2369_v14  ;;  %v2599_v14 = vld [vmem:[%s4274_s12 + $0x10] sm:$0xff] }
0x15fa   :  { %3294 = vmatprep.subr.mxu0 %v2368_v15 }
0x15fb   :  { %3295 = vmatpush3.msra.mxu0 %v2368_v15  ;;  %v2597_v15 = vld [vmem:[%s4274_s12] sm:$0xff] }
0x15fc   :  { %3296 = vmatprep.subr.mxu0 %v2367_v16 }
0x15fd   :  { %3297 = vmatpush3.msra.mxu0 %v2367_v16  ;;  %v2689_v16 = vld [vmem:[%s4275_s14 + $0x38] sm:$0xff] }
0x15fe   :  { %3319 = vmatprep.subr.mxu0 %v3497_v2 }
0x16b0   :  { %v2331_v10 = vpop.f32.mrf.mxu1 }
0x16b2   :  { %v3289_v12 = vpop.f32.mrf.mxu1 }
0x16b6   :  { %v2259_v57 = vpop.f32.mrf.mxu0 }
0x16b7   :  { %v2332_v58 = vadd.f32 %v2331_v10, %v2259_v57 }
0x16b8   :  { %v3278_v59 = vpop.f32.mrf.mxu0 }
0x16b9   :  { %v2335_v60 = vadd.f32 %v3496_v24, %v2332_v58 }
0x16bb   :  { %3464 = vtanh.f32 %v2335_v60  ;;  %v2820_v62 = vmul.f32 -1.442695, %v2335_v60 }
0x16bd   :  { %3466 = vpow2.f32 %v2820_v62 }
0x16c8   :  { %v3465_v61 = vpop.eup %3464 }
0x16c9   :  { %2345 = vrot.lane.b32.xlu0 %v3465_v61, %s3499_s1 }
0x16ca   :  { %v3467_v63 = vpop.eup %3466 }
0x16cb   :  { %v2339_v0 = vadd.f32 1.0, %v3467_v63 }
0x16cd   :  { %3468 = vrcp.f32 %v2339_v0 }
0x16da   :  { %v3469_v1 = vpop.eup %3468 }
0x16db   :  { %v2343_v5 = vmul.f32 %v3469_v1, %v2080_v52 }
0x173b   :  { %v2346_v3 = vpop.permute.xlu0 %2345 }
0x173c   :  { %v2348_v4 = vmul.f32 %v3469_v1, %v2346_v3 }
0x173e   :  { %2350 = vrot.lane.b32.xlu1 %v2348_v4, %s3500_s3 }
0x17b0   :  { %v2351_v6 = vpop.permute.xlu1 %2350 }
0x17b1   :  { %v2353_v9 = vadd.f32 %v2351_v6, %v2343_v5 }
0x17b3   :  { %3470 = vtanh.f32 %v2353_v9 }
0x17c0   :  { %v3471_v11 = vpop.eup %3470 }
0x17c1   :  { %2356 = vrot.lane.b32.xlu0 %v3471_v11, %s3499_s1  ;;  %v2520_v11 = vld [vmem:[%s4273_s11] sm:$0x3] }
0x1833   :  { %v2357_v17 = vpop.permute.xlu0 %2356 }
0x1834   :  { %v2359_v18 = vmul.f32 %v3469_v1, %v2357_v17  ;;  %v2688_v17 = vld [vmem:[%s4275_s14 + $0x30] sm:$0xff] }
0x1836   :  { %2361 = vrot.lane.b32.xlu1 %v2359_v18, %s3500_s3  ;;  %v2687_v18 = vld [vmem:[%s4275_s14 + $0x28] sm:$0xff] }
0x18a8   :  { %v2362_v19 = vpop.permute.xlu1 %2361 }
0x18a9   :  { %2364 = vst.msk [vmem:[#allocation3 + $0xe] sm:$0x3] %vm452_vm2, %v2362_v19  ;;  %v2686_v19 = vld [vmem:[%s4275_s14 + $0x20] sm:$0xff] }
0x18b0   :  { %v4166_v20 = vld [vmem:[#allocation3 + $0x8] sm:$0xff] }
0x18b1   :  { %3299 = vmatmul.mubr.msk.f32.vlgmr.msra.gmra.mxu0 %vm173_vm1, %v4166_v20 }
0x18b2   :  { %3335 = vmatprep.mubr.msk.f32.mxu0 %vm3498_vm0, %v3497_v2  ;;  %3320 = vmatpush3.msra.mxu0 %v2689_v16 }
0x18b3   :  { %3321 = vmatprep.subr.mxu0 %v3497_v2 }
0x18b4   :  { %3322 = vmatpush3.msra.mxu0 %v2688_v17 }
0x18b5   :  { %3323 = vmatprep.subr.mxu0 %v3497_v2 }
0x18b6   :  { %3324 = vmatpush3.msra.mxu0 %v2687_v18 }
0x18b7   :  { %3325 = vmatprep.subr.mxu0 %v3497_v2 }
0x18b8   :  { %3326 = vmatpush3.msra.mxu0 %v2686_v19 }
0x18b9   :  { %3327 = vmatprep.subr.mxu0 %v3497_v2 }
0x1971   :  { %v3300_v22 = vpop.f32.mrf.mxu0 }
0x1972   :  { %v2456_v23 = vadd.f32 %v3300_v22, %v2821_v21 }
0x1973   :  { %v2450_v24 = vpop.f32.mrf.mxu0 }
0x1974   :  { %3472 = vtanh.f32 %v2456_v23  ;;  %v2451_v25 = vadd.f32 %v2821_v21, %v2450_v24  ;;  %v2684_v23 = vld [vmem:[%s4275_s14 + $0x10] sm:$0xff]  ;;  %v2683_v24 = vld [vmem:[%s4275_s14 + $0x8] sm:$0xff] }
0x1976   :  { %3474 = vtanh.f32 %v2451_v25  ;;  %v2682_v25 = vld [vmem:[%s4275_s14] sm:$0xff] }
0x1981   :  { %v3473_v27 = vpop.eup %3472 }
0x1982   :  { %v2469_v28 = vmul.f32 %v3473_v27, %v2824_v26  ;;  %v2826_v27 = vld [vmem:[%s4277_s13] ss:$0 sm:$0xff] }
0x1983   :  { %v3475_v29 = vpop.eup %3474 }
0x1984   :  { %v2473_v30 = vsel %vm173_vm1, %v2469_v28, 0.0  ;;  %v2468_v31 = vmul.f32 %v3475_v29, %v2824_v26  ;;  %v23_v26 = vstv %s4276_s15 }
0x1985   :  { %2474 = vadd.xlane.f32.xlu1 %v2473_v30  ;;  %24 = vst [vmem:[#allocation4] sm:$0x1] %v23_v26 }
0x1986   :  { %v2470_v42 = vsel %vm173_vm1, %v2468_v31, 0.0 }
0x1987   :  { %2471 = vadd.xlane.f32.xlu0 %v2470_v42 }
0x1a0e   :  { %v2475_v43 = vpop.xlane.xlu1 %2474 }
0x1a10   :  { %v2472_v44 = vpop.xlane.xlu0 %2471 }
0x1a11   :  { %v2476_v45 = vmax.f32 %v2472_v44, %v2475_v43 }
0x1a13   :  { %v2477_v32 = vrot.slane %v2476_v45, 4 }
0x1a15   :  { %v2478_v33 = vmax.f32 %v2476_v45, %v2477_v32 }
0x1a17   :  { %v2479_v49 = vrot.slane %v2478_v33, 2 }
0x1a19   :  { %v2480_v34 = vmax.f32 %v2478_v33, %v2479_v49 }
0x1a1b   :  { %v2481_v35 = vrot.slane %v2480_v34, 1 }
0x1a1d   :  { %v2482_v36 = vmax.f32 %v2480_v34, %v2481_v35 }
0x1a1f   :  { %3338 = vpush %v2482_v36 }
0x1a50   :  { %s3339_s8 = spop %3338 }
0x1a51   :  { %v2484_v37 = vstv %s3339_s8 }
0x1a52   :  { %v2485_v51 = vsub.f32 %v2472_v44, %v2484_v37  ;;  %v2486_v38 = vsub.f32 %v2475_v43, %v2484_v37 }
0x1a54   :  { %v2487_v39 = vmul.f32 1.442695, %v2485_v51  ;;  %v2489_v52 = vmul.f32 1.442695, %v2486_v38 }
0x1a56   :  { %3476 = vpow2.f32 %v2487_v39 }
0x1a57   :  { %3478 = vpow2.f32 %v2489_v52 }
0x1a63   :  { %v3477_v41 = vpop.eup %3476 }
0x1a64   :  { %v3479_v46 = vpop.eup %3478  ;;  %v2493_v47 = vmul.f32 %v3477_v41, %v2491_v40 }
0x1a65   :  { %v2494_v48 = vmul.f32 %v3479_v46, %v2492_v53 }
0x1a66   :  { %v2496_v56 = vsel %vm2495_vm3, %v2493_v47, 0.0 }
0x1a67   :  { %v2497_v50 = vsel %vm2495_vm3, %v2494_v48, 0.0 }
0x1a68   :  { %v2498_v54 = vadd.f32 %v2497_v50, %v2496_v56 }
0x1a6a   :  { %v2499_v55 = vrot.slane %v2498_v54, 4 }
0x1a6c   :  { %v2500_v7 = vadd.f32 %v2499_v55, %v2498_v54 }
0x1a6e   :  { %v2501_v10 = vrot.slane %v2500_v7, 2 }
0x1a70   :  { %v2502_v12 = vadd.f32 %v2501_v10, %v2500_v7 }
0x1a72   :  { %v2503_v57 = vrot.slane %v2502_v12, 1 }
0x1a74   :  { %v2504_v58 = vadd.f32 %v2503_v57, %v2502_v12 }
0x1a76   :  { %v2506_v59 = vmul.f32 %v2504_v58, %v2492_v53  ;;  %v2505_v61 = vmul.f32 %v2504_v58, %v2491_v40 }
0x1a78   :  { %v2510_v60 = vsel %vm2495_vm3, %v2506_v59, 0.0  ;;  %v2507_v62 = vsel %vm2495_vm3, %v2505_v61, 0.0 }
0x1a79   :  { %2511 = vadd.xlane.f32.xlu0 %v2510_v60 }
0x1a7d   :  { %2508 = vadd.xlane.f32.xlu0 %v2507_v62 }
0x1b02   :  { %v2512_v63 = vpop.xlane.xlu0 %2511 }
0x1b03   :  { %3480 = vrcp.f32 %v2512_v63 }
0x1b06   :  { %v2509_v0 = vpop.xlane.xlu0 %2508 }
0x1b07   :  { %3482 = vrcp.f32 %v2509_v0 }
0x1b10   :  { %v3481_v1 = vpop.eup %3480 }
0x1b11   :  { %v2516_v3 = vmul.f32 %v3481_v1, %v3479_v46 }
0x1b13   :  { %2519 = vst.msk [vmem:[%s4272_s17 + $0x8] sm:$0xff] %vm2517_vm4, %v2516_v3  ;;  %v2522_v4 = vmul.f32 %v2516_v3, %v4166_v20  ;;  %v2685_v20 = vld [vmem:[%s4275_s14 + $0x18] sm:$0xff] }
0x1b14   :  { %v3483_v5 = vpop.eup %3482  ;;  %3328 = vmatpush3.msra.mxu0 %v2685_v20 }
0x1b15   :  { %3302 = vmatpush3.msra.mxu1 %v2522_v4  ;;  %v2514_v6 = vmul.f32 %v3483_v5, %v3477_v41  ;;  %3329 = vmatprep.subr.mxu0 %v3497_v2 }
0x1b16   :  { %3303 = vmatprep.subr.mxu1 %v3497_v2  ;;  %3330 = vmatpush3.msra.mxu0 %v2684_v23 }
0x1b17   :  { %2518 = vst.msk [vmem:[%s4272_s17] sm:$0xff] %vm2517_vm4, %v2514_v6  ;;  %v2521_v9 = vmul.f32 %v2514_v6, %v4144_v8  ;;  %v2598_v8 = vld [vmem:[%s4274_s12 + $0x8] sm:$0xff]  ;;  %3331 = vmatprep.subr.mxu0 %v3497_v2 }
0x1b18   :  { %3332 = vmatpush3.msra.mxu0 %v2683_v24 }
0x1b19   :  { %3304 = vmatpush3.msra.mxu1 %v2521_v9  ;;  %3333 = vmatprep.subr.mxu0 %v3497_v2 }
0x1b1a   :  { %3306 = vmatmul.mubr.msk.f32.vlgmr.msra.gmra.mxu1 %vm2523_vm5, %v2520_v11  ;;  %3308 = vmatprep.subr.mxu1 %v3497_v2 }
0x1b1b   :  { %3309 = vmatpush3.msra.mxu1 %v2600_v13  ;;  %3316 = vmatprep.mubr.msk.f32.mxu1 %vm3498_vm0, %v3497_v2 }
0x1b1c   :  { %3310 = vmatprep.subr.mxu1 %v3497_v2  ;;  %3334 = vmatpush3.msra.mxu0 %v2682_v25 }
0x1b1d   :  { %3311 = vmatpush3.msra.mxu1 %v2599_v14 }
0x1b1e   :  { %3312 = vmatprep.subr.mxu1 %v3497_v2 }
0x1b1f   :  { %3313 = vmatpush3.msra.mxu1 %v2598_v8 }
0x1b20   :  { %3314 = vmatprep.subr.mxu1 %v3497_v2  ;;  %v2828_v2 = vld [vmem:[#allocation4] ss:$0 sm:$0xff] }
0x1b21   :  { %3315 = vmatpush3.msra.mxu1 %v2597_v15 }
0x1bda   :  { %v2593_v21 = vpop.f32.mrf.mxu1 }
0x1bdb   :  { %3317 = vmatmul.mubr.msk.f32.vlgmr.msra.gmra.mxu1 %vm173_vm1, %v2593_v21 }
0x1bdc   :  { %v3307_v22 = vpop.f32.mrf.mxu1 }
0x1c9b   :  { %v2677_v28 = vpop.f32.mrf.mxu1 }
0x1c9c   :  { %v2678_v29 = vadd.f32 %v2826_v27, %v2677_v28 }
0x1c9d   :  { %v3318_v30 = vpop.f32.mrf.mxu1 }
0x1c9e   :  { %v2681_v31 = vmax.f32 %v2678_v29, 0.0 }
0x1ca0   :  { %3336 = vmatmul.mubr.msk.f32.vlgmr.msra.gmra.mxu0 %vm2697_vm6, %v2681_v31 }
0x1d60   :  { %v2767_v42 = vpop.f32.mrf.mxu0 }
0x1d61   :  { %v2768_v43 = vadd.f32 %v2828_v2, %v2767_v42 }
0x1d62   :  { %v3337_v44 = vpop.f32.mrf.mxu0 }
0x1d63   :  { %2772 = vst.msk [vmem:[%s4278_s16] sm:$0x3] %vm2771_vm7, %v2768_v43 }

</bundles_post_ra>
